<compile_context>
chip_gen: v5e
topology: v5e:2x2
jax: 0.10.0
libtpu: 0.0.40
codegen_flags: <defaults>
</compile_context>

<pallas_src>
import functools

import jax
import jax.numpy as jnp
from jax.experimental import pallas as pl
from jax.experimental.pallas import tpu as pltpu

LN_EPS = 1e-5      # torch.nn.LayerNorm default eps
LANE = 128


def _round_up(x, m):
    return ((x + m - 1) // m) * m


def _pad_to(a, shape):
    return jnp.pad(a, [(0, t - s) for s, t in zip(a.shape, shape)])


def _sublane_multiple(dtype):
    # f32 -> 8, bf16 -> 16, int8/fp8 -> 32 (packed sublanes).
    return max(8, 32 // jnp.dtype(dtype).itemsize)


def _device_profile():
    """(vmem budget for tiling, default vmem_limit_bytes, max row tile) per TPU generation."""
    kind = ""
    try:
        kind = jax.devices()[0].device_kind.lower()
    except Exception:
        pass
    if "v6" in kind:
        # 128 MiB VMEM, 256-wide MXU: large row tiles amortize per-step overhead.
        return 96 << 20, 100 << 20, 1024
    if "v5" in kind or "v4" in kind:
        # 128 MiB VMEM, 128-wide MXU: modest tiles; spend VMEM on resident weights instead.
        return 96 << 20, 100 << 20, 256
    # v7x (64 MiB VMEM per TensorCore) and unknown chips: conservative.
    return 44 << 20, 52 << 20, 256


def _vmem_footprint(tm, e_pad, f_pad, f_max, cbytes, obytes, n_wbuf):
    weights = 2 * e_pad * f_pad * cbytes * n_wbuf          # W1 + W2 blocks
    vecs = 4 * f_max * 4 * n_wbuf                          # packed f32 bias/gamma/beta/b2
    io = 2 * tm * e_pad * (cbytes + obytes)                # double-buffered x / out tiles
    temps = 3 * tm * f_pad * 4 + tm * e_pad * 4            # live f32 intermediates (h, h*h, hn, o)
    return weights + vecs + io + temps


def _choose_tm(m1, m2, sub, tm_max, budget, e_pad, f_pad, f_max, cbytes, obytes, n_wbuf):
    cap = min(_round_up(max(tm_max, sub), sub), _round_up(max(m1, m2, 1), sub))
    cap = max(cap, sub)
    # Largest TM (multiple of the sublane packing) whose footprint fits the VMEM budget.
    tm = sub
    t = cap
    while t >= sub:
        if _vmem_footprint(t, e_pad, f_pad, f_max, cbytes, obytes, n_wbuf) <= budget:
            tm = t
            break
        t -= sub
    # Bound modality-boundary padding waste (matters when M1 << M2): dead rows still cost
    # full MXU + DMA work.
    waste = lambda t: (-m1) % t + (-m2) % t
    limit = max(4 * sub, (m1 + m2) // 8)
    while tm > sub and waste(tm) > limit:
        tm = max(sub, _round_up(tm // 2, sub))
    return tm


def _apply_activation(h, activation):
    if activation == "relu":
        return jnp.maximum(h, 0.0)
    if activation == "silu":
        return h * jax.nn.sigmoid(h)
    # The module falls back to gelu for anything else; F.gelu default is the exact erf form.
    return jax.nn.gelu(h, approximate=False)


def _ffn_kernel(mod_ref, x_ref, w1_ref, vec_ref, w2_ref, o_ref, *,
                ffn_dim, e_pad, f_pad, activation):
    # mod_ref (scalar prefetch) is only consumed by the index_maps.
    del mod_ref
    f32 = jnp.float32
    b1 = vec_ref[0:1, :f_pad].astype(f32)
    gamma = vec_ref[1:2, :f_pad].astype(f32)
    beta = vec_ref[2:3, :f_pad].astype(f32)
    b2 = vec_ref[3:4, :e_pad].astype(f32)

    # Linear 1 (MXU, stored-dtype operands, f32 accumulation) + activation.
    h = jnp.dot(x_ref[...], w1_ref[...], preferred_element_type=f32)
    h = _apply_activation(h + b1, activation)

    # LayerNorm over the true ffn_dim.  Padded lanes of h are exact zeros (zero W1 pad
    # columns, zero b1 pad, act(0) = 0), so the unmasked sums are exact; gamma/beta pads
    # are zero so padded lanes of hn stay zero and are inert in Linear 2.
    inv_f = 1.0 / float(ffn_dim)
    mean = jnp.sum(h, axis=-1, keepdims=True) * inv_f
    msq = jnp.sum(h * h, axis=-1, keepdims=True) * inv_f
    var = jnp.maximum(msq - mean * mean, 0.0)
    hn = (h - mean) * jax.lax.rsqrt(var + LN_EPS)
    hn = hn * gamma + beta

    # Linear 2 (the trailing Dropout is identity at inference).
    o = jnp.dot(hn.astype(w2_ref.dtype), w2_ref[...], preferred_element_type=f32)
    o_ref[...] = (o + b2).astype(o_ref.dtype)


def dual_feed_forward(x1, x2, params1, params2, *, activation="relu",
                      mxu_dtype=jnp.bfloat16, tm=None, vmem_limit_bytes=None,
                      single_buffer_weights=True):
    """Pallas implementation of DualFeedForward.forward (inference mode).

    x1: [B, S1, E], x2: [B, S2, E]; params*: (W1, b1, gamma, beta, W2, b2) with
    W1:(E,F), W2:(F,E) (i.e. transposed torch Linear weights), vectors of size F / E.
    mxu_dtype: dtype fed to the MXU (f32 accumulation).  Defaults to bf16 for throughput
    and VMEM; pass jnp.float32 to track the fp32 torch module to ~1e-4.
    """
    w1a, b1a, ga, bta, w2a, b2a = params1
    w1b, b1b, gb, btb, w2b, b2b = params2

    B1, S1, E = x1.shape
    B2, S2, _ = x2.shape
    F = w1a.shape[-1]

    E_pad = _round_up(E, LANE)
    F_pad = _round_up(F, LANE)
    F_max = max(E_pad, F_pad)

    cdt = jnp.dtype(mxu_dtype) if mxu_dtype is not None else jnp.dtype(x1.dtype)
    out_dtype = jnp.promote_types(x1.dtype, x2.dtype)
    cbytes = cdt.itemsize
    obytes = jnp.dtype(out_dtype).itemsize

    M1, M2 = B1 * S1, B2 * S2

    budget, default_limit, tm_max = _device_profile()
    if tm is not None:
        tm_max = tm
    sub = max(_sublane_multiple(cdt), _sublane_multiple(out_dtype))
    n_wbuf = 1 if single_buffer_weights else 2
    TM = _choose_tm(M1, M2, sub, tm_max, budget, E_pad, F_pad, F_max, cbytes, obytes, n_wbuf)
    M1p, M2p = _round_up(M1, TM), _round_up(M2, TM)
    n_tiles = (M1p + M2p) // TM
    total_rows = M1p + M2p

    if vmem_limit_bytes is None:
        est = _vmem_footprint(TM, E_pad, F_pad, F_max, cbytes, obytes, n_wbuf)
        vmem_limit_bytes = max(default_limit, est + (4 << 20))

    # Rows of both modalities, zero padded, concatenated along the grid axis.
    # Modality-1 tiles first: with dimension_semantics=("parallel",) each TensorCore takes
    # a contiguous half, so for balanced workloads each core holds a single weight set.
    x_all = jnp.concatenate(
        [_pad_to(x1.reshape(M1, E).astype(cdt), (M1p, E_pad)),
         _pad_to(x2.reshape(M2, E).astype(cdt), (M2p, E_pad))], axis=0)
    # TODO(synk): for decode-style shapes (small F) the concat/pad and the output slices
    # below are extra HBM round-trips; a memory_space=pl.ANY manual-DMA variant would
    # remove them.

    def stack_w(pa, pb, shape):
        return jnp.stack([_pad_to(pa, shape), _pad_to(pb, shape)]).astype(cdt)

    w1s = stack_w(w1a, w1b, (E_pad, F_pad))
    w2s = stack_w(w2a, w2b, (F_pad, E_pad))

    def vec_pack(b1, g, bt, b2):
        def v(p, d):
            return _pad_to(jnp.asarray(p, jnp.float32).reshape(1, d), (1, F_max))
        return jnp.concatenate([v(b1, F), v(g, F), v(bt, F), v(b2, E)], axis=0)

    vecs = jnp.stack([vec_pack(b1a, ga, bta, b2a), vec_pack(b1b, gb, btb, b2b)])

    # Per-row-tile modality id (scalar prefetch -> drives the parameter index_maps).
    mod_ids = jnp.concatenate(
        [jnp.zeros((M1p // TM,), jnp.int32), jnp.ones((M2p // TM,), jnp.int32)])

    x_map = lambda i, mod: (i, 0)
    p_map = lambda i, mod: (mod[i], 0, 0)

    try:
        cost = pl.CostEstimate(
            flops=4 * total_rows * E_pad * F_pad,
            transcendentals=total_rows,
            bytes_accessed=int(x_all.size) * cbytes
                           + total_rows * E_pad * obytes
                           + int(w1s.size + w2s.size) * cbytes
                           + int(vecs.size) * 4)
    except Exception:
        cost = None

    kernel = functools.partial(_ffn_kernel, ffn_dim=F, e_pad=E_pad, f_pad=F_pad,
                               activation=activation)

    def run(single_buf):
        # Parameter blocks have a per-modality-constant index_map, so single-buffering them
        # halves resident weight VMEM; the only exposed DMA is at the modality boundary.
        wkw = dict(pipeline_mode=pl.Buffered(1)) if single_buf else {}
        grid_spec = pltpu.PrefetchScalarGridSpec(
            num_scalar_prefetch=1,
            grid=(n_tiles,),
            in_specs=[
                pl.BlockSpec((TM, E_pad), x_map),                               # x rows
                pl.BlockSpec((None, E_pad, F_pad), p_map, **wkw),               # W1
                pl.BlockSpec((None, 4, F_max), p_map, **wkw),                   # b1/gamma/beta/b2
                pl.BlockSpec((None, F_pad, E_pad), p_map, **wkw),               # W2
            ],
            out_specs=pl.BlockSpec((TM, E_pad), x_map),
        )
        return pl.pallas_call(
            kernel,
            out_shape=jax.ShapeDtypeStruct((total_rows, E_pad), out_dtype),
            grid_spec=grid_spec,
            compiler_params=pltpu.CompilerParams(
                dimension_semantics=("parallel",),
                vmem_limit_bytes=int(vmem_limit_bytes)),
            cost_estimate=cost,
        )(mod_ids, x_all, w1s, vecs, w2s)

    if single_buffer_weights:
        try:
            out = run(True)
        except Exception:
            out = run(False)    # fallback for jax versions without BlockSpec pipeline_mode
    else:
        out = run(False)

    y1 = out[:M1, :E].reshape(B1, S1, E)
    y2 = out[M1p:M1p + M2, :E].reshape(B2, S2, E)
    return y1, y2


def _init_ffn_params(key, embed_dim, ffn_dim, dtype=jnp.float32):
    k1, k2, k3, k4 = jax.random.split(key, 4)
    lim1 = 1.0 / (embed_dim ** 0.5)
    lim2 = 1.0 / (ffn_dim ** 0.5)
    w1 = jax.random.uniform(k1, (embed_dim, ffn_dim), dtype, -lim1, lim1)
    b1 = jax.random.uniform(k2, (1, ffn_dim), dtype, -lim1, lim1)
    gamma = jnp.ones((1, ffn_dim), dtype)
    beta = jnp.zeros((1, ffn_dim), dtype)
    w2 = jax.random.uniform(k3, (ffn_dim, embed_dim), dtype, -lim2, lim2)
    b2 = jax.random.uniform(k4, (1, embed_dim), dtype, -lim2, lim2)
    return (w1, b1, gamma, beta, w2, b2)


def _ffn_reference(x, params):
    w1, b1, gamma, beta, w2, b2 = params
    h = jnp.maximum(x @ w1 + b1, 0.0)
    mean = jnp.mean(h, axis=-1, keepdims=True)
    var = jnp.mean((h - mean) ** 2, axis=-1, keepdims=True)
    hn = (h - mean) / jnp.sqrt(var + LN_EPS) * gamma + beta
    return hn @ w2 + b2


if __name__ == "__main__":
    key = jax.random.PRNGKey(0)
    k_x1, k_x2, k_p1, k_p2 = jax.random.split(key, 4)

    batch, seq1, seq2 = 2, 8, 12
    embed_dim, ffn_dim = 32, 64

    x1 = jax.random.normal(k_x1, (batch, seq1, embed_dim), jnp.float32)
    x2 = jax.random.normal(k_x2, (batch, seq2, embed_dim), jnp.float32)

    params1 = _init_ffn_params(k_p1, embed_dim, ffn_dim)
    params2 = _init_ffn_params(k_p2, embed_dim, ffn_dim)

    r1 = _ffn_reference(x1, params1)
    r2 = _ffn_reference(x2, params2)

    # Default (bf16 MXU operands, f32 accumulation) — the performance path.
    y1, y2 = dual_feed_forward(x1, x2, params1, params2)
    jax.block_until_ready((y1, y2))
    assert y1.shape == (batch, seq1, embed_dim)
    assert y2.shape == (batch, seq2, embed_dim)
    assert jnp.allclose(y1, r1, atol=5e-2, rtol=5e-2)
    assert jnp.allclose(y2, r2, atol=5e-2, rtol=5e-2)

    # f32 MXU path — tracks the fp32 reference tightly.
    z1, z2 = dual_feed_forward(x1, x2, params1, params2, mxu_dtype=jnp.float32)
    jax.block_until_ready((z1, z2))
    assert jnp.allclose(z1, r1, atol=1e-4, rtol=1e-4)
    assert jnp.allclose(z2, r2, atol=1e-4, rtol=1e-4)

    print("KERNEL_OK")
</pallas_src>

<mosaic_0001>
module attributes {stable_mosaic.version = 11 : i64} {
  func.func @_ffn_kernel(%arg0: i32, %arg1: memref<2xi32, #tpu.memory_space<smem>>, %arg2: memref<32x128xbf16, #tpu.memory_space<vmem>>, %arg3: memref<1x128x128xbf16, #tpu.memory_space<vmem>>, %arg4: memref<1x4x128xf32, #tpu.memory_space<vmem>>, %arg5: memref<1x128x128xbf16, #tpu.memory_space<vmem>>, %arg6: memref<32x128xf32, #tpu.memory_space<vmem>>) attributes {dimension_semantics = [#tpu.dimension_semantics<parallel>], iteration_bounds = array<i64: 2>, scalar_prefetch = 1 : i64, scratch_operands = 0 : i64, tpu.core_type = #tpu.core_type<tc>, window_params = [{transform_indices = @transform_0, window_bounds = array<i64: 32, 128>}, {pipeline_mode = #tpu.pipeline_mode<synchronous>, transform_indices = @transform_1, window_bounds = array<i64: 1, 128, 128>}, {pipeline_mode = #tpu.pipeline_mode<synchronous>, transform_indices = @transform_2, window_bounds = array<i64: 1, 4, 128>}, {pipeline_mode = #tpu.pipeline_mode<synchronous>, transform_indices = @transform_3, window_bounds = array<i64: 1, 128, 128>}, {transform_indices = @transform_4, window_bounds = array<i64: 32, 128>}]} {
    %c0 = arith.constant 0 : index
    %c0_0 = arith.constant 0 : index
    %c0_1 = arith.constant 0 : index
    %0 = vector.load %arg4[%c0, %c0_0, %c0_1] : memref<1x4x128xf32, #tpu.memory_space<vmem>>, vector<1x1x128xf32>
    %1 = vector.shape_cast %0 : vector<1x1x128xf32> to vector<1x128xf32>
    %c0_2 = arith.constant 0 : index
    %c1 = arith.constant 1 : index
    %c0_3 = arith.constant 0 : index
    %2 = vector.load %arg4[%c0_2, %c1, %c0_3] : memref<1x4x128xf32, #tpu.memory_space<vmem>>, vector<1x1x128xf32>
    %3 = vector.shape_cast %2 : vector<1x1x128xf32> to vector<1x128xf32>
    %c0_4 = arith.constant 0 : index
    %c2 = arith.constant 2 : index
    %c0_5 = arith.constant 0 : index
    %4 = vector.load %arg4[%c0_4, %c2, %c0_5] : memref<1x4x128xf32, #tpu.memory_space<vmem>>, vector<1x1x128xf32>
    %5 = vector.shape_cast %4 : vector<1x1x128xf32> to vector<1x128xf32>
    %c0_6 = arith.constant 0 : index
    %c3 = arith.constant 3 : index
    %c0_7 = arith.constant 0 : index
    %6 = vector.load %arg4[%c0_6, %c3, %c0_7] : memref<1x4x128xf32, #tpu.memory_space<vmem>>, vector<1x1x128xf32>
    %7 = vector.shape_cast %6 : vector<1x1x128xf32> to vector<1x128xf32>
    %c0_8 = arith.constant 0 : index
    %c0_9 = arith.constant 0 : index
    %8 = vector.load %arg2[%c0_8, %c0_9] : memref<32x128xbf16, #tpu.memory_space<vmem>>, vector<32x128xbf16>
    %c0_10 = arith.constant 0 : index
    %c0_11 = arith.constant 0 : index
    %c0_12 = arith.constant 0 : index
    %9 = vector.load %arg3[%c0_10, %c0_11, %c0_12] : memref<1x128x128xbf16, #tpu.memory_space<vmem>>, vector<1x128x128xbf16>
    %10 = vector.shape_cast %9 : vector<1x128x128xbf16> to vector<128x128xbf16>
    %cst = arith.constant dense<0.000000e+00> : vector<32x128xf32>
    %11 = tpu.matmul %8, %10, %cst {dimension_numbers = #tpu.dot_dimension_numbers<[1], [0], [0], [1], [0, 0, 1, 1], [], []>} : vector<32x128xbf16>, vector<128x128xbf16>, vector<32x128xf32> -> vector<32x128xf32>
    %12 = vector.broadcast %1 : vector<1x128xf32> to vector<32x128xf32>
    %13 = arith.addf %11, %12 : vector<32x128xf32>
    %cst_13 = arith.constant 0.000000e+00 : f32
    %14 = vector.broadcast %cst_13 : f32 to vector<32x128xf32>
    %15 = arith.maximumf %13, %14 : vector<32x128xf32>
    %cst_14 = arith.constant dense<0.000000e+00> : vector<32xf32>
    %16 = vector.multi_reduction <add>, %15, %cst_14 [1] : vector<32x128xf32> to vector<32xf32>
    %17 = vector.shape_cast %16 : vector<32xf32> to vector<32x1xf32>
    %cst_15 = arith.constant 1.562500e-02 : f32
    %18 = vector.broadcast %cst_15 : f32 to vector<32x1xf32>
    %19 = arith.mulf %17, %18 : vector<32x1xf32>
    %20 = arith.mulf %15, %15 : vector<32x128xf32>
    %cst_16 = arith.constant dense<0.000000e+00> : vector<32xf32>
    %21 = vector.multi_reduction <add>, %20, %cst_16 [1] : vector<32x128xf32> to vector<32xf32>
    %22 = vector.shape_cast %21 : vector<32xf32> to vector<32x1xf32>
    %cst_17 = arith.constant 1.562500e-02 : f32
    %23 = vector.broadcast %cst_17 : f32 to vector<32x1xf32>
    %24 = arith.mulf %22, %23 : vector<32x1xf32>
    %25 = arith.mulf %19, %19 : vector<32x1xf32>
    %26 = arith.subf %24, %25 : vector<32x1xf32>
    %cst_18 = arith.constant 0.000000e+00 : f32
    %27 = vector.broadcast %cst_18 : f32 to vector<32x1xf32>
    %28 = arith.maximumf %26, %27 : vector<32x1xf32>
    %29 = vector.broadcast %19 : vector<32x1xf32> to vector<32x128xf32>
    %30 = arith.subf %15, %29 : vector<32x128xf32>
    %cst_19 = arith.constant 9.99999974E-6 : f32
    %31 = vector.broadcast %cst_19 : f32 to vector<32x1xf32>
    %32 = arith.addf %28, %31 : vector<32x1xf32>
    %33 = math.rsqrt %32 : vector<32x1xf32>
    %34 = vector.broadcast %33 : vector<32x1xf32> to vector<32x128xf32>
    %35 = arith.mulf %30, %34 : vector<32x128xf32>
    %36 = vector.broadcast %3 : vector<1x128xf32> to vector<32x128xf32>
    %37 = arith.mulf %35, %36 : vector<32x128xf32>
    %38 = vector.broadcast %5 : vector<1x128xf32> to vector<32x128xf32>
    %39 = arith.addf %37, %38 : vector<32x128xf32>
    %40 = arith.truncf %39 : vector<32x128xf32> to vector<32x128xbf16>
    %c0_20 = arith.constant 0 : index
    %c0_21 = arith.constant 0 : index
    %c0_22 = arith.constant 0 : index
    %41 = vector.load %arg5[%c0_20, %c0_21, %c0_22] : memref<1x128x128xbf16, #tpu.memory_space<vmem>>, vector<1x128x128xbf16>
    %42 = vector.shape_cast %41 : vector<1x128x128xbf16> to vector<128x128xbf16>
    %cst_23 = arith.constant dense<0.000000e+00> : vector<32x128xf32>
    %43 = tpu.matmul %40, %42, %cst_23 {dimension_numbers = #tpu.dot_dimension_numbers<[1], [0], [0], [1], [0, 0, 1, 1], [], []>} : vector<32x128xbf16>, vector<128x128xbf16>, vector<32x128xf32> -> vector<32x128xf32>
    %44 = vector.broadcast %7 : vector<1x128xf32> to vector<32x128xf32>
    %45 = arith.addf %43, %44 : vector<32x128xf32>
    %c0_24 = arith.constant 0 : index
    %c0_25 = arith.constant 0 : index
    %46 = vector.load %arg6[%c0_24, %c0_25] : memref<32x128xf32, #tpu.memory_space<vmem>>, vector<32x128xf32>
    tpu.vector_store %arg6[%c0_24, %c0_25], %45 {strides = array<i32>} : memref<32x128xf32, #tpu.memory_space<vmem>>, vector<32x128xf32>,
    return
  }
  func.func @transform_0(%arg0: i32, %arg1: memref<2xi32, #tpu.memory_space<smem>>) -> (i32, i32) {
    %c0_i32 = arith.constant 0 : i32
    %c0_i32_0 = arith.constant 0 : i32
    return %arg0, %c0_i32 : i32, i32
  }
  func.func @transform_1(%arg0: i32, %arg1: memref<2xi32, #tpu.memory_space<smem>>) -> (i32, i32, i32) {
    %0 = arith.index_cast %arg0 : i32 to index
    %1 = memref.load %arg1[%0] : memref<2xi32, #tpu.memory_space<smem>>
    %c0_i32 = arith.constant 0 : i32
    %c0_i32_0 = arith.constant 0 : i32
    %c0_i32_1 = arith.constant 0 : i32
    return %1, %c0_i32, %c0_i32_0 : i32, i32, i32
  }
  func.func @transform_2(%arg0: i32, %arg1: memref<2xi32, #tpu.memory_space<smem>>) -> (i32, i32, i32) {
    %0 = arith.index_cast %arg0 : i32 to index
    %1 = memref.load %arg1[%0] : memref<2xi32, #tpu.memory_space<smem>>
    %c0_i32 = arith.constant 0 : i32
    %c0_i32_0 = arith.constant 0 : i32
    %c0_i32_1 = arith.constant 0 : i32
    return %1, %c0_i32, %c0_i32_0 : i32, i32, i32
  }
  func.func @transform_3(%arg0: i32, %arg1: memref<2xi32, #tpu.memory_space<smem>>) -> (i32, i32, i32) {
    %0 = arith.index_cast %arg0 : i32 to index
    %1 = memref.load %arg1[%0] : memref<2xi32, #tpu.memory_space<smem>>
    %c0_i32 = arith.constant 0 : i32
    %c0_i32_0 = arith.constant 0 : i32
    %c0_i32_1 = arith.constant 0 : i32
    return %1, %c0_i32, %c0_i32_0 : i32, i32, i32
  }
  func.func @transform_4(%arg0: i32, %arg1: memref<2xi32, #tpu.memory_space<smem>>) -> (i32, i32) {
    %c0_i32 = arith.constant 0 : i32
    %c0_i32_0 = arith.constant 0 : i32
    return %arg0, %c0_i32 : i32, i32
  }
}

module attributes {stable_mosaic.version = 11 : i64} {
  func.func @_ffn_kernel(%arg0: i32, %arg1: memref<2xi32, #tpu.memory_space<smem>>, %arg2: memref<32x128xbf16, #tpu.memory_space<vmem>>, %arg3: memref<1x128x128xbf16, #tpu.memory_space<vmem>>, %arg4: memref<1x4x128xf32, #tpu.memory_space<vmem>>, %arg5: memref<1x128x128xbf16, #tpu.memory_space<vmem>>, %arg6: memref<32x128xf32, #tpu.memory_space<vmem>>) attributes {dimension_semantics = [#tpu.dimension_semantics<parallel>], iteration_bounds = array<i64: 2>, scalar_prefetch = 1 : i64, scratch_operands = 0 : i64, tpu.core_type = #tpu.core_type<tc>, window_params = [{transform_indices = @transform_0, window_bounds = array<i64: 32, 128>}, {transform_indices = @transform_1, window_bounds = array<i64: 1, 128, 128>}, {transform_indices = @transform_2, window_bounds = array<i64: 1, 4, 128>}, {transform_indices = @transform_3, window_bounds = array<i64: 1, 128, 128>}, {transform_indices = @transform_4, window_bounds = array<i64: 32, 128>}]} {
    %c0 = arith.constant 0 : index
    %c0_0 = arith.constant 0 : index
    %c0_1 = arith.constant 0 : index
    %0 = vector.load %arg4[%c0, %c0_0, %c0_1] : memref<1x4x128xf32, #tpu.memory_space<vmem>>, vector<1x1x128xf32>
    %1 = vector.shape_cast %0 : vector<1x1x128xf32> to vector<1x128xf32>
    %c0_2 = arith.constant 0 : index
    %c1 = arith.constant 1 : index
    %c0_3 = arith.constant 0 : index
    %2 = vector.load %arg4[%c0_2, %c1, %c0_3] : memref<1x4x128xf32, #tpu.memory_space<vmem>>, vector<1x1x128xf32>
    %3 = vector.shape_cast %2 : vector<1x1x128xf32> to vector<1x128xf32>
    %c0_4 = arith.constant 0 : index
    %c2 = arith.constant 2 : index
    %c0_5 = arith.constant 0 : index
    %4 = vector.load %arg4[%c0_4, %c2, %c0_5] : memref<1x4x128xf32, #tpu.memory_space<vmem>>, vector<1x1x128xf32>
    %5 = vector.shape_cast %4 : vector<1x1x128xf32> to vector<1x128xf32>
    %c0_6 = arith.constant 0 : index
    %c3 = arith.constant 3 : index
    %c0_7 = arith.constant 0 : index
    %6 = vector.load %arg4[%c0_6, %c3, %c0_7] : memref<1x4x128xf32, #tpu.memory_space<vmem>>, vector<1x1x128xf32>
    %7 = vector.shape_cast %6 : vector<1x1x128xf32> to vector<1x128xf32>
    %c0_8 = arith.constant 0 : index
    %c0_9 = arith.constant 0 : index
    %8 = vector.load %arg2[%c0_8, %c0_9] : memref<32x128xbf16, #tpu.memory_space<vmem>>, vector<32x128xbf16>
    %c0_10 = arith.constant 0 : index
    %c0_11 = arith.constant 0 : index
    %c0_12 = arith.constant 0 : index
    %9 = vector.load %arg3[%c0_10, %c0_11, %c0_12] : memref<1x128x128xbf16, #tpu.memory_space<vmem>>, vector<1x128x128xbf16>
    %10 = vector.shape_cast %9 : vector<1x128x128xbf16> to vector<128x128xbf16>
    %cst = arith.constant dense<0.000000e+00> : vector<32x128xf32>
    %11 = tpu.matmul %8, %10, %cst {dimension_numbers = #tpu.dot_dimension_numbers<[1], [0], [0], [1], [0, 0, 1, 1], [], []>} : vector<32x128xbf16>, vector<128x128xbf16>, vector<32x128xf32> -> vector<32x128xf32>
    %12 = vector.broadcast %1 : vector<1x128xf32> to vector<32x128xf32>
    %13 = arith.addf %11, %12 : vector<32x128xf32>
    %cst_13 = arith.constant 0.000000e+00 : f32
    %14 = vector.broadcast %cst_13 : f32 to vector<32x128xf32>
    %15 = arith.maximumf %13, %14 : vector<32x128xf32>
    %cst_14 = arith.constant dense<0.000000e+00> : vector<32xf32>
    %16 = vector.multi_reduction <add>, %15, %cst_14 [1] : vector<32x128xf32> to vector<32xf32>
    %17 = vector.shape_cast %16 : vector<32xf32> to vector<32x1xf32>
    %cst_15 = arith.constant 1.562500e-02 : f32
    %18 = vector.broadcast %cst_15 : f32 to vector<32x1xf32>
    %19 = arith.mulf %17, %18 : vector<32x1xf32>
    %20 = arith.mulf %15, %15 : vector<32x128xf32>
    %cst_16 = arith.constant dense<0.000000e+00> : vector<32xf32>
    %21 = vector.multi_reduction <add>, %20, %cst_16 [1] : vector<32x128xf32> to vector<32xf32>
    %22 = vector.shape_cast %21 : vector<32xf32> to vector<32x1xf32>
    %cst_17 = arith.constant 1.562500e-02 : f32
    %23 = vector.broadcast %cst_17 : f32 to vector<32x1xf32>
    %24 = arith.mulf %22, %23 : vector<32x1xf32>
    %25 = arith.mulf %19, %19 : vector<32x1xf32>
    %26 = arith.subf %24, %25 : vector<32x1xf32>
    %cst_18 = arith.constant 0.000000e+00 : f32
    %27 = vector.broadcast %cst_18 : f32 to vector<32x1xf32>
    %28 = arith.maximumf %26, %27 : vector<32x1xf32>
    %29 = vector.broadcast %19 : vector<32x1xf32> to vector<32x128xf32>
    %30 = arith.subf %15, %29 : vector<32x128xf32>
    %cst_19 = arith.constant 9.99999974E-6 : f32
    %31 = vector.broadcast %cst_19 : f32 to vector<32x1xf32>
    %32 = arith.addf %28, %31 : vector<32x1xf32>
    %33 = math.rsqrt %32 : vector<32x1xf32>
    %34 = vector.broadcast %33 : vector<32x1xf32> to vector<32x128xf32>
    %35 = arith.mulf %30, %34 : vector<32x128xf32>
    %36 = vector.broadcast %3 : vector<1x128xf32> to vector<32x128xf32>
    %37 = arith.mulf %35, %36 : vector<32x128xf32>
    %38 = vector.broadcast %5 : vector<1x128xf32> to vector<32x128xf32>
    %39 = arith.addf %37, %38 : vector<32x128xf32>
    %40 = arith.truncf %39 : vector<32x128xf32> to vector<32x128xbf16>
    %c0_20 = arith.constant 0 : index
    %c0_21 = arith.constant 0 : index
    %c0_22 = arith.constant 0 : index
    %41 = vector.load %arg5[%c0_20, %c0_21, %c0_22] : memref<1x128x128xbf16, #tpu.memory_space<vmem>>, vector<1x128x128xbf16>
    %42 = vector.shape_cast %41 : vector<1x128x128xbf16> to vector<128x128xbf16>
    %cst_23 = arith.constant dense<0.000000e+00> : vector<32x128xf32>
    %43 = tpu.matmul %40, %42, %cst_23 {dimension_numbers = #tpu.dot_dimension_numbers<[1], [0], [0], [1], [0, 0, 1, 1], [], []>} : vector<32x128xbf16>, vector<128x128xbf16>, vector<32x128xf32> -> vector<32x128xf32>
    %44 = vector.broadcast %7 : vector<1x128xf32> to vector<32x128xf32>
    %45 = arith.addf %43, %44 : vector<32x128xf32>
    %c0_24 = arith.constant 0 : index
    %c0_25 = arith.constant 0 : index
    %46 = vector.load %arg6[%c0_24, %c0_25] : memref<32x128xf32, #tpu.memory_space<vmem>>, vector<32x128xf32>
    tpu.vector_store %arg6[%c0_24, %c0_25], %45 {strides = array<i32>} : memref<32x128xf32, #tpu.memory_space<vmem>>, vector<32x128xf32>,
    return
  }
  func.func @transform_0(%arg0: i32, %arg1: memref<2xi32, #tpu.memory_space<smem>>) -> (i32, i32) {
    %c0_i32 = arith.constant 0 : i32
    %c0_i32_0 = arith.constant 0 : i32
    return %arg0, %c0_i32 : i32, i32
  }
  func.func @transform_1(%arg0: i32, %arg1: memref<2xi32, #tpu.memory_space<smem>>) -> (i32, i32, i32) {
    %0 = arith.index_cast %arg0 : i32 to index
    %1 = memref.load %arg1[%0] : memref<2xi32, #tpu.memory_space<smem>>
    %c0_i32 = arith.constant 0 : i32
    %c0_i32_0 = arith.constant 0 : i32
    %c0_i32_1 = arith.constant 0 : i32
    return %1, %c0_i32, %c0_i32_0 : i32, i32, i32
  }
  func.func @transform_2(%arg0: i32, %arg1: memref<2xi32, #tpu.memory_space<smem>>) -> (i32, i32, i32) {
    %0 = arith.index_cast %arg0 : i32 to index
    %1 = memref.load %arg1[%0] : memref<2xi32, #tpu.memory_space<smem>>
    %c0_i32 = arith.constant 0 : i32
    %c0_i32_0 = arith.constant 0 : i32
    %c0_i32_1 = arith.constant 0 : i32
    return %1, %c0_i32, %c0_i32_0 : i32, i32, i32
  }
  func.func @transform_3(%arg0: i32, %arg1: memref<2xi32, #tpu.memory_space<smem>>) -> (i32, i32, i32) {
    %0 = arith.index_cast %arg0 : i32 to index
    %1 = memref.load %arg1[%0] : memref<2xi32, #tpu.memory_space<smem>>
    %c0_i32 = arith.constant 0 : i32
    %c0_i32_0 = arith.constant 0 : i32
    %c0_i32_1 = arith.constant 0 : i32
    return %1, %c0_i32, %c0_i32_0 : i32, i32, i32
  }
  func.func @transform_4(%arg0: i32, %arg1: memref<2xi32, #tpu.memory_space<smem>>) -> (i32, i32) {
    %c0_i32 = arith.constant 0 : i32
    %c0_i32_0 = arith.constant 0 : i32
    return %arg0, %c0_i32 : i32, i32
  }
}

</mosaic_0001>

<bundles_post_ra>
// kernel: tpu_custom_call.1
= control target key start
LH: loop header
LB: loop body
LE: loop exit
PB: predicated region body
PF: predicated region fallthrough
CT: control target
= control target key end

     0   :  { %s1323_s21 = smov [#allocation3]   ;;  %s1810_s0 = inlined_call_operand.hbm [shape: s32[2], index: 0, kind: input, shape index: {}]   ;;  %s1811_s1 = inlined_call_operand.hbm [shape: bf16[64,128], index: 1, kind: input, shape index: {}]   ;;  %s1812_s2 = inlined_call_operand.hbm [shape: bf16[2,128,128], index: 2, kind: input, shape index: {}]   ;;  %s1813_s3 = inlined_call_operand.hbm [shape: f32[2,4,128], index: 3, kind: input, shape index: {}]   ;;  %s1814_s4 = inlined_call_operand.hbm [shape: bf16[2,128,128], index: 4, kind: input, shape index: {}]   ;;  %s1815_s5 = inlined_call_operand.hbm [shape: f32[64,128], index: 5, kind: output, shape index: {}]  }
   0x1   :  { %1848 = sst [smem:[#allocation39_spill]] %s1812_s2  ;;  %s11_s20 = sshll.u32 %s1810_s0, 4  ;;  %s12_s20 = int_to_ptr.hbm [resolvable:$true] %s11_s20 }
   0x2   :  { %1849 = sst [smem:[#allocation40_spill]] %s1813_s3 }
   0x3   :  { %1850 = sst [smem:[#allocation41_spill]] %s1814_s4 }
   0x4   :  { %1851 = sst [smem:[#allocation42_spill]] %s1815_s5 }
   0x5   :  { %14 = dma.hbm_to_smem %s12_s20, 16, %s1323_s21, [#allocation2] }
   0x6   :  { %1249 = dma.done.wait [#allocation2], 16 }
   0x7   :  { %1250 = vsyncadd [#allocation2], 4294967280 }
   0x8   :  { %17 = sfence }
   0x9   :  { %18 = vsyncpa [#allocation5], 0 }
   0xa   :  { %20 = vsyncpa [#allocation5 + $0x1], 0 }
   0xb   :  { %21 = vsyncpa [#allocation8], 0 }
   0xc   :  { %22 = vsyncpa [#allocation11], 0 }
   0xd   :  { %23 = vsyncpa [#allocation6], 0 }
   0xe   :  { %25 = vsyncpa [#allocation6 + $0x1], 0  ;;  %s1364_s22 = smov 0   ;;  %s1366_s23 = smov 0  }
   0xf   :  { %s1368_s24 = smov 0   ;;  %s1370_s25 = smov 0  }
  0x10   :  { %s1372_s0 = smov 0   ;;  %s1374_s26 = smov 0  }
  0x11   :  { %s1376_s27 = smov 0   ;;  %s1378_s28 = smov 0  }
  0x12   :  { %s1380_s29 = smov 0   ;;  %s1382_s30 = smov 0  }
  0x13   :  { %s1384_s6 = smov 0   ;;  %s1386_s7 = smov 0  }
  0x14   :  { %s1388_s8 = smov 0  }
  0x15 LB: > { %1852 = sst [smem:[#allocation25_spill]] %s1277_s23  ;;  %s1428_s9 = sadd.s32 4294967295, %s1321_s8   ;;  %s1321_s8 = sphi %s1388_s8, %s1911_s8   ;;  %s1317_s7 = sphi %s1386_s7, %s1916_s7   ;;  %s1313_s6 = sphi %s1384_s6, %s1925_s6   ;;  %s1309_s30 = sphi %s1382_s30, %s1924_s30   ;;  %s1305_s29 = sphi %s1380_s29, %s1923_s29   ;;  %s1301_s28 = sphi %s1378_s28, %s1922_s28   ;;  %s1297_s27 = sphi %s1376_s27, %s1914_s27   ;;  %s1293_s26 = sphi %s1374_s26, %s1921_s26   ;;  %s1289_s0 = sphi %s1372_s0, %s1920_s0   ;;  %s1285_s25 = sphi %s1370_s25, %s1913_s25   ;;  %s1281_s24 = sphi %s1368_s24, %s1919_s24   ;;  %s1277_s23 = sphi %s1366_s23, %s1918_s23   ;;  %s1273_s22 = sphi %s1364_s22, %s1912_s22  }
  0x16   : > { %1853 = sst [smem:[#allocation26_spill]] %s1289_s0  ;;  %p79_p0 = scmp.ne.s32.totalorder %s1301_s28, %s1297_s27 }
  0x17   : > { %1854 = sst [smem:[#allocation27_spill]] %s1301_s28  ;;  %p1828_p1 = scmp.eq.s32.totalorder %s1428_s9, 0 }
  0x18   : > { %1855 = sst [smem:[#allocation28_spill]] %s1309_s30  ;;  %p737_p2 = scmp.ge.s32.totalorder %s1321_s8, 1 }
  0x19   : > { %1856 = sst [smem:[#allocation29_spill]] %s1317_s7  ;;  %p172_p3 = scmp.lt.s32.totalorder %s1321_s8, 3 }
  0x1a   : > { %1857 = sst [smem:[#allocation30_spill]] %s1428_s9  ;;  %p1436_p4 = por %p79_p0, %p1828_p1 }
  0x1b   : > { %s1324_s11 = smov [#allocation7]   ;;  %p1442_p5 = pnand %p737_p2, %p172_p3 }
  0x1c   : > { %s1858_s10 = scalar_select %p1436_p4, 1, 0 }
  0x1d   : > { %s1440_s12 = sshll.u32 %s1324_s11, 4  ;;  %p1817_p6 = pneg %p1442_p5 }
  0x1e   : > { %1859 = sst [smem:[#allocation31_spill]] %s1858_s10  ;;  %p107_p9 = scmp.ne.s32.totalorder %s1289_s0, %s1285_s25 }
  0x1f   : > { %1860 = sst [smem:[#allocation32_spill]] %s1440_s12  ;;  %p1463_p7 = pnand %p1817_p6, %p1436_p4 }
  0x20   : > { %s865_s14 = scalar_select %p1436_p4, [#allocation3], [#allocation13] }
  0x21   : > { %s866_s15 = scalar_select %p1436_p4, %s1428_s9, 0 }
  0x22   : > { %s1927_s14 = smov (%p1442_p5, %s865_s14), [#allocation16]  ;;  %s1325_s18 = smov [#allocation9]  }
  0x23   : > { %s1929_s15 = smov (%p1442_p5, %s866_s15), 0  ;;  %s1470_s19 = sshll.u32 %s1325_s18, 4 }
  0x24   : > { %s181_s17 = sld [smem:[%s1927_s14 + %s1929_s15]]  ;;  %p1475_p10 = por %p107_p9, %p1828_p1 }
  0x25   : > { %1863 = sst [smem:[#allocation33_spill]] %s1470_s19  ;;  %p1053_p13 = pneg %p1463_p7 }
  0x26   : > { %s1864_s21 = scalar_select %p1475_p10, 1, 0 }
  0x27   : > { %s1866_s2 = sld [smem:[#allocation39_spill]]  ;;  %p1487_p11 = pnand %p1817_p6, %p1475_p10 }
  0x28   : > { %1865 = sst [smem:[#allocation34_spill]] %s1864_s21 }
  0x2a   : > { %s827_s20 = sshll.u32 %s181_s17, 6 }
  0x2d   : > { %s186_s12 = scalar_lea.hbm %s1866_s2, %s827_s20 }
  0x2e   : > { %s187_s14 = sshll.u32 %s186_s12, 4  ;;  %s1056_s12 = scalar_lea.hbm %s1866_s2, 128  ;;  %s188_s14 = int_to_ptr.hbm [resolvable:$true] %s187_s14 }
  0x2f   : > { %s1049_s15 = sshra.s32 %s188_s14, 4  ;;  %s1050_s15 = int_to_ptr.hbm [resolvable:$true] %s1049_s15 }
  0x30   : > { %s1051_s17 = scalar_lea.hbm %s1050_s15, 64  ;;  %p1057_p3 = scmp.lt.s32.totalorder %s1050_s15, %s1866_s2 }
  0x31   : > { %p1052_p12 = scmp.ne.s32.totalorder %s1050_s15, %s1051_s17  ;;  %p1058_p9 = scmp.lt.s32.totalorder %s1056_s12, %s1051_s17 }
  0x33   : > { %p1054_p0 = pnand %p1053_p13, %p1052_p12  ;;  %p1059_p8 = por %p1058_p9, %p1057_p3 }
  0x35   : > { %p1055_p2 = pneg %p1054_p0 }
  0x37   : > { %p1060_p6 = pnand %p1059_p8, %p1055_p2 }
  0x39   : > { %1063 = shalt.err (!%p1060_p6)
}
  0x3a   : > { %s1820_s19 = smov 64   ;;  %s1868_s28 = sld [smem:[#allocation32_spill]] }
  0x3b   : > { %s1822_s18 = smov 4   ;;  %p135_p6 = scmp.ne.s32.totalorder %s1277_s23, %s1273_s22 }
  0x3c   : > { %s868_s17 = scalar_select %p1475_p10, [#allocation3], [#allocation14] }
  0x3d   : > { %s869_s27 = scalar_select %p1475_p10, %s1428_s9, 0 }
  0x3e   : > { %s1931_s17 = smov (%p1442_p5, %s868_s17), [#allocation17]  ;;  %p1519_p8 = por %p135_p6, %p1828_p1 }
  0x3f   : > { %s1933_s27 = smov (%p1442_p5, %s869_s27), 0  ;;  %s1875_s3 = sld [smem:[#allocation40_spill]] }
  0x40   : > { %s1869_s15 = int_to_ptr.vmem [resolvable:$true] %s1868_s28  ;;  %s199_s12 = sld [smem:[%s1931_s17 + %s1933_s27]] }
  0x41   : > { %886 = dma.hbm_to_vmem [thread:$0]  (!%p1463_p7), %s188_s14, 1024, %s1869_s15, [#allocation8], %s1820_s19, %s1820_s19, %s1822_s18  }
  0x42   : > { %s1870_s20 = scalar_select %p1519_p8, 1, 0 }
  0x43   : > { %s1328_s28 = smov [#allocation10]   ;;  %p1873_p7 = pneg %p1442_p5 }
  0x44   : > { %1871 = sst [smem:[#allocation32_spill]] %s1870_s20  ;;  %s1523_s16 = sshll.u32 %s1328_s28, 4 }
  0x45   : > { %1872 = sst [smem:[#allocation35_spill]] %s1523_s16  ;;  %p1536_p12 = pnand %p1873_p7, %p1519_p8 }
  0x46   : > { %s871_s14 = scalar_select %p1519_p8, [#allocation3], [#allocation15] }
  0x47   : > { %s872_s11 = scalar_select %p1519_p8, %s1428_s9, 0 }
  0x48   : > { %s740_s15 = sshll.u32 %s199_s12, 2  ;;  %p1083_p0 = pneg %p1487_p11 }
  0x49   : > { %s203_s19 = scalar_lea.hbm %s1875_s3, %s740_s15  ;;  %s1086_s0 = scalar_lea.hbm %s1875_s3, 8 }
  0x4a   : > { %s205_s28 = sshll.u32 %s203_s19, 4  ;;  %s206_s28 = int_to_ptr.hbm [resolvable:$true] %s205_s28 }
  0x4b   : > { %s1079_s18 = sshra.s32 %s206_s28, 4  ;;  %s1080_s18 = int_to_ptr.hbm [resolvable:$true] %s1079_s18 }
  0x4c   : > { %s1081_s16 = scalar_lea.hbm %s1080_s18, 4  ;;  %p1087_p9 = scmp.lt.s32.totalorder %s1080_s18, %s1875_s3 }
  0x4d   : > { %p1082_p13 = scmp.ne.s32.totalorder %s1080_s18, %s1081_s16  ;;  %p1088_p6 = scmp.lt.s32.totalorder %s1086_s0, %s1081_s16 }
  0x4f   : > { %p1084_p2 = pnand %p1083_p0, %p1082_p13  ;;  %p1089_p7 = por %p1088_p6, %p1087_p9 }
  0x51   : > { %p1085_p3 = pneg %p1084_p2 }
  0x53   : > { %p1090_p1 = pnand %p1089_p7, %p1085_p3 }
  0x55   : > { %1093 = shalt.err (!%p1090_p1)
}
  0x56   : > { %s1876_s19 = sld [smem:[#allocation33_spill]]  ;;  %s1935_s14 = smov (%p1442_p5, %s871_s14), [#allocation18] }
  0x57   : > { %s1937_s11 = smov (%p1442_p5, %s872_s11), 0  ;;  %s1561_s23 = sadd.s32 1, %s1321_s8  }
  0x58   : > { %s214_s2 = sld [smem:[%s1935_s14 + %s1937_s11]]  ;;  %s38_s0 = sadd.s32 1, %s1317_s7 }
  0x59   : > { %1878 = sst [smem:[#allocation36_spill]] %s1561_s23  ;;  %s35_s25 = ssub.s32 %s1321_s8, %s1561_s23 }
  0x5a   : > { %p1829_p1 = scmp.ne.s32.totalorder %s1317_s7, %s1313_s6  ;;  %p1568_p13 = scmp.eq.s32.totalorder %s35_s25, 0 }
  0x5b   : > { %s1880_s4 = sld [smem:[#allocation41_spill]]  ;;  %p1113_p9 = pneg %p1536_p12 }
  0x5c   : > { %s1877_s15 = int_to_ptr.vmem [resolvable:$true] %s1876_s19 }
  0x5d   : > { %891 = dma.hbm_to_vmem [thread:$0]  (!%p1487_p11), %s206_s28, 64, %s1877_s15, [#allocation8]  }
  0x5e   : > { %s828_s18 = sshll.u32 %s214_s2, 6  ;;  %p46_p11 = scmp.eq.s32.totalorder %s1321_s8, 0 }
  0x60   : > { %p1581_p2 = por %p46_p11, %p1829_p1 }
  0x61   : > { %s219_s28 = scalar_lea.hbm %s1880_s4, %s828_s18  ;;  %s1116_s25 = scalar_lea.hbm %s1880_s4, 128 }
  0x62   : > { %s220_s12 = sshll.u32 %s219_s28, 4  ;;  %s221_s12 = int_to_ptr.hbm [resolvable:$true] %s220_s12 }
  0x63   : > { %s1109_s11 = sshra.s32 %s221_s12, 4  ;;  %s1110_s11 = int_to_ptr.hbm [resolvable:$true] %s1109_s11 }
  0x64   : > { %s1111_s19 = scalar_lea.hbm %s1110_s11, 64  ;;  %p1117_p0 = scmp.lt.s32.totalorder %s1110_s11, %s1880_s4 }
  0x65   : > { %p1112_p3 = scmp.ne.s32.totalorder %s1110_s11, %s1111_s19  ;;  %p1118_p11 = scmp.lt.s32.totalorder %s1116_s25, %s1111_s19 }
  0x67   : > { %p1114_p6 = pnand %p1113_p9, %p1112_p3  ;;  %p1119_p1 = por %p1118_p11, %p1117_p0 }
  0x69   : > { %p1115_p7 = pneg %p1114_p6 }
  0x6b   : > { %p1120_p8 = pnand %p1119_p1, %p1115_p7 }
  0x6d   : > { %1123 = shalt.err (!%p1120_p8)
}
  0x6e   : > { %s1882_s27 = smov 4   ;;  %s1883_s28 = smov 64  }
  0x6f   : > { %s1884_s5 = sld [smem:[#allocation35_spill]]  ;;  %p1887_p8 = scmp.ne.s32.totalorder %s1313_s6, %s1309_s30 }
  0x70   : > { %s1603_s22 = scalar_select %p1568_p13, %s1317_s7, %s38_s0  }
  0x71   : > { %p1888_p1 = scmp.eq.s32.totalorder %s1428_s9, 0  ;;  %s61_s11 = sld [smem:[#allocation3 + %s1321_s8]] }
  0x72   : > { %1886 = sst [smem:[#allocation37_spill]] %s1603_s22  ;;  %s66_s15 = sadd.s32 1, %s1305_s29 }
  0x73   : > { %p1610_p0 = por %p1888_p1, %p1887_p8  ;;  %s62_s19 = sld [smem:[#allocation3 + %s1561_s23]] }
  0x74   : > { %s89_s2 = sld [smem:[#allocation3 + %s1321_s8]]  ;;  %s94_s25 = sadd.s32 1, %s1293_s26 }
  0x75   : > { %s1885_s3 = int_to_ptr.vmem [resolvable:$true] %s1884_s5  ;;  %s90_s18 = sld [smem:[#allocation3 + %s1561_s23]] }
  0x76   : > { %896 = dma.hbm_to_vmem [thread:$0]  (!%p1536_p12), %s221_s12, 1024, %s1885_s3, [#allocation11], %s1883_s28, %s1883_s28, %s1882_s27  }
  0x77   : > { %s1889_s5 = scalar_select %p1610_p0, 1, 0 }
  0x78   : > { %s122_s3 = sadd.s32 1, %s1281_s24  ;;  %s117_s16 = sld [smem:[#allocation3 + %s1321_s8]] }
  0x79   : > { %1890 = sst [smem:[#allocation33_spill]] %s1889_s5  ;;  %p159_p12 = scmp.eq.s32.totalorder %s1428_s9, 1 }
  0x7a   : > { %s118_s0 = sld [smem:[#allocation3 + %s1561_s23]]  ;;  %s1891_s12 = sadd.s32 4294967294, %s1321_s8  }
  0x7b   : > { %p165_p13 = scmp.eq.s32.totalorder %s1891_s12, 1  ;;  %p1892_p3 = scmp.ne.s32.totalorder %s1317_s7, %s1313_s6 }
  0x7c   : > { %p911_p6 = scmp.lt.s32.totalorder %s1321_s8, 2  ;;  %s63_s4 = ssub.s32 %s61_s11, %s62_s19 }
  0x7d   : > { %p1629_p9 = por %p159_p12, %p1892_p3  ;;  %p1895_p7 = pmov %p1887_p8 }
  0x7e   : > { %p64_p8 = scmp.eq.s32.totalorder %s63_s4, 0  ;;  %s236_s20 = sand.u32 1, %s1317_s7  }
  0x7f   : > { %s1893_s17 = scalar_select %p1629_p9, 1, 0 }
  0x80   : > { %p1637_p11 = por %p165_p13, %p1895_p7  ;;  %s91_s23 = ssub.s32 %s89_s2, %s90_s18 }
  0x81   : > { %1894 = sst [smem:[#allocation35_spill]] %s1893_s17  ;;  %p92_p1 = scmp.eq.s32.totalorder %s91_s23, 0 }
  0x82   : > { %s1896_s22 = scalar_select %p1637_p11, 1, 0 }
  0x83   : > { %s1643_s9 = scalar_select %p64_p8, %s1305_s29, %s66_s15  }
  0x84   : > { %1897 = sst [smem:[#allocation38_spill]] %s1896_s22  ;;  %s119_s12 = ssub.s32 %s117_s16, %s118_s0 }
  0x85   : > { %p120_p12 = scmp.eq.s32.totalorder %s119_s12, 0  ;;  %s744_s21 = sshll.u32 %s236_s20, 4 }
  0x86   : > { %s1646_s10 = scalar_select %p92_p1, %s1293_s26, %s94_s25  }
  0x87   : > { %s1649_s17 = scalar_select %p120_p12, %s1281_s24, %s122_s3  }
  0x88   : > { %s829_s11 = sshll.u32 %s1321_s8, 4  ;;  %s240_s4 = scalar_lea.vmem [#allocation4], %s744_s21 }
  0x89   : > { %s245_s22 = scalar_lea.hbm %s1811_s1, %s829_s11  ;;  %s248_s7 = sshll.u32 %s240_s4, 4  ;;  %s249_s7 = int_to_ptr.vmem [resolvable:$true] %s248_s7 }
  0x8a   : > { %s246_s5 = sshll.u32 %s245_s22, 4  ;;  %p1659_p13 = pnand %p911_p6, %p1581_p2  ;;  %s247_s5 = int_to_ptr.hbm [resolvable:$true] %s246_s5 }
  0x8b   : > { %s237_s15 = scalar_lea.sflag [#allocation5], %s236_s20  ;;  %s1139_s2 = sshra.s32 %s247_s5, 4  ;;  %s1140_s2 = int_to_ptr.hbm [resolvable:$true] %s1139_s2 }
  0x8c   : > { %s1141_s25 = scalar_lea.hbm %s1140_s2, 16  ;;  %p1143_p7 = pneg %p1659_p13 }
  0x8d   : > { %p1142_p3 = scmp.ne.s32.totalorder %s1140_s2, %s1141_s25  ;;  %s1146_s22 = scalar_lea.hbm %s1811_s1, 32 }
  0x8e   : > { %p1147_p2 = scmp.lt.s32.totalorder %s1140_s2, %s1811_s1  ;;  %p1148_p6 = scmp.lt.s32.totalorder %s1146_s22, %s1141_s25 }
  0x8f   : > { %p1144_p8 = pnand %p1143_p7, %p1142_p3 }
  0x90   : > { %p1149_p12 = por %p1148_p6, %p1147_p2 }
  0x91   : > { %p1145_p1 = pneg %p1144_p8 }
  0x93   : > { %p1150_p11 = pnand %p1149_p12, %p1145_p1 }
  0x95   : > { %1153 = shalt.err (!%p1150_p11)
}
  0x96   : > { %900 = dma.hbm_to_vmem [thread:$0]  (!%p1659_p13), %s247_s5, 256, %s249_s7, %s237_s15, %s1883_s28, %s1883_s28, %s1882_s27  }
  0x97   : > { %260 = sbr.rel (%p1442_p5) target bundleno = 646 (0x286), region = 36  ;;  %s1679_s3 = sand.u32 (!%p1442_p5), 1, %s1313_s6  }
  0x98   : > { %s748_s16 = sshll.u32 (!%p1442_p5), %s1679_s3, 4  ;;  %s263_s0 = scalar_lea.sflag (!%p1442_p5), [#allocation5], %s1679_s3 }
  0x99   : > { %s1683_s12 = scalar_lea.vmem (!%p1442_p5), [#allocation4], %s748_s16 }
  0x9c   : > { %1252 = dma.done.wait (%p1610_p0), %s263_s0, 256  }
  0x9d   : > { %1254 = vsyncadd (%p1610_p0), %s263_s0, 4294967040 }
  0x9e   : > { %1256 = dma.done.wait (%p1436_p4), [#allocation8], 1024  }
  0x9f   : > { %1258 = vsyncadd (%p1436_p4), [#allocation8], 4294966272 }
  0xa0   : > { %1260 = dma.done.wait (%p1475_p10), [#allocation8], 64  }
  0xa1   : > { %1262 = vsyncadd (%p1475_p10), [#allocation8], 4294967232  ;;  %s1902_s13 = sld [smem:[#allocation32_spill]] }
  0xa7   : > { %p1903_p5 = scmp.ne.s32.totalorder %s1902_s13, 0 }
  0xa9   : > { %1264 = dma.done.wait (%p1903_p5), [#allocation11], 1024  }
  0xaa   : > { %1266 = vsyncadd (%p1903_p5), [#allocation11], 4294966272  ;;  %v839_v0 = vld [vmem:[#allocation7 + $0x38] sm:$0xff]  ;;  %v838_v1 = vld [vmem:[#allocation7 + $0x30] sm:$0xff]  ;;  %s1904_s27 = sld [smem:[#allocation30_spill]]  ;;  %s749_s28 = sshll.u32 %s1679_s3, 5 }
  0xab   : > { %397 = vmatpush.bf16.msra.mxu0 %v839_v0  ;;  %849 = vmatpush.bf16.msra.mxu2 %v839_v0  ;;  %v837_v2 = vld [vmem:[#allocation7 + $0x28] sm:$0xff]  ;;  %v836_v3 = vld [vmem:[#allocation7 + $0x20] sm:$0xff]  ;;  %v835_v4 = vld [vmem:[#allocation7 + $0x18] sm:$0xff]  ;;  %s306_s19 = scalar_lea.vmem [#allocation12], %s749_s28  ;;  %s1905_s15 = sld [smem:[#allocation42_spill]] }
  0xac   : > { %v834_v5 = vld [vmem:[#allocation7 + $0x10] sm:$0xff]  ;;  %v833_v6 = vld [vmem:[#allocation7 + $0x8] sm:$0xff]  ;;  %v832_v7 = vld [vmem:[#allocation7] sm:$0xff]  ;;  %s625_s30 = sshll.u32 %s306_s19, 4  ;;  %s613_s22 = scalar_lea.sflag [#allocation6], %s1679_s3  ;;  %s626_s30 = int_to_ptr.vmem [resolvable:$true] %s625_s30 }
  0xad   : > { %v830_v8 = vld [vmem:[%s1683_s12] sm:$0xff]  ;;  %v831_v9 = vld [vmem:[%s1683_s12 + $0x8] sm:$0xff] }
  0xae   : > { %v1025_v10 = vld [vmem:[#allocation9] ss:$0 sm:$0xff]  ;;  %v846_v28 = vld [vmem:[#allocation10 + $0x30] sm:$0xff]  ;;  %v845_v29 = vld [vmem:[#allocation10 + $0x28] sm:$0xff] }
  0xaf   : > { %398 = vmatpush.bf16.msra.mxu0 %v838_v1  ;;  %850 = vmatpush.bf16.msra.mxu2 %v838_v1  ;;  %v847_v27 = vld [vmem:[#allocation10 + $0x38] sm:$0xff]  ;;  %v844_v30 = vld [vmem:[#allocation10 + $0x20] sm:$0xff]  ;;  %v842_v34 = vld [vmem:[#allocation10 + $0x10] sm:$0xff] }
  0xb0   : > { %857 = vmatpush.bf16.msra.mxu3 %v847_v27  ;;  %589 = vmatpush.bf16.msra.mxu1 %v847_v27  ;;  %v843_v31 = vld [vmem:[#allocation10 + $0x18] sm:$0xff]  ;;  %v841_v40 = vld [vmem:[#allocation10 + $0x8] sm:$0xff]  ;;  %v840_v45 = vld [vmem:[#allocation10] sm:$0xff]  ;;  %s848_s5 = sshll.u32 %s1904_s27, 5 }
  0xb1   : > { %s624_s2 = scalar_lea.hbm %s1905_s15, %s848_s5  ;;  %s1189_s0 = scalar_lea.hbm %s1905_s15, 64 }
  0xb2   : > { %s627_s21 = sshll.u32 %s624_s2, 4  ;;  %s628_s21 = int_to_ptr.hbm [resolvable:$true] %s627_s21 }
  0xb3   : > { %399 = vmatpush.bf16.msra.mxu0 %v837_v2  ;;  %851 = vmatpush.bf16.msra.mxu2 %v837_v2  ;;  %s1183_s14 = sshra.s32 %s628_s21, 4  ;;  %s1184_s14 = int_to_ptr.hbm [resolvable:$true] %s1183_s14 }
  0xb4   : > { %858 = vmatpush.bf16.msra.mxu3 %v846_v28  ;;  %590 = vmatpush.bf16.msra.mxu1 %v846_v28  ;;  %s1185_s18 = scalar_lea.hbm %s1184_s14, 32  ;;  %p1190_p11 = scmp.lt.s32.totalorder %s1184_s14, %s1905_s15 }
  0xb5   : > { %p1186_p4 = scmp.ne.s32.totalorder %s1184_s14, %s1185_s18  ;;  %p1191_p13 = scmp.lt.s32.totalorder %s1189_s0, %s1185_s18 }
  0xb7   : > { %400 = vmatpush.bf16.msra.mxu0 %v836_v3  ;;  %852 = vmatpush.bf16.msra.mxu2 %v836_v3  ;;  %p1187_p10 = pnand %p1186_p4, %p1629_p9  ;;  %p1192_p3 = por %p1191_p13, %p1190_p11 }
  0xb8   : > { %859 = vmatpush.bf16.msra.mxu3 %v845_v29  ;;  %591 = vmatpush.bf16.msra.mxu1 %v845_v29 }
  0xb9   : > { %p1188_p0 = pneg %p1187_p10 }
  0xbb   : > { %401 = vmatpush.bf16.msra.mxu0 %v835_v4  ;;  %853 = vmatpush.bf16.msra.mxu2 %v835_v4  ;;  %p1193_p7 = pnand %p1192_p3, %p1188_p0 }
  0xbc   : > { %860 = vmatpush.bf16.msra.mxu3 %v844_v30  ;;  %592 = vmatpush.bf16.msra.mxu1 %v844_v30 }
  0xbf   : > { %402 = vmatpush.bf16.msra.mxu0 %v834_v5  ;;  %854 = vmatpush.bf16.msra.mxu2 %v834_v5 }
  0xc0   : > { %861 = vmatpush.bf16.msra.mxu3 %v843_v31  ;;  %593 = vmatpush.bf16.msra.mxu1 %v843_v31 }
  0xc3   : > { %403 = vmatpush.bf16.msra.mxu0 %v833_v6  ;;  %855 = vmatpush.bf16.msra.mxu2 %v833_v6 }
  0xc4   : > { %862 = vmatpush.bf16.msra.mxu3 %v842_v34  ;;  %594 = vmatpush.bf16.msra.mxu1 %v842_v34 }
  0xc7   : > { %404 = vmatpush.bf16.msra.mxu0 %v832_v7  ;;  %856 = vmatpush.bf16.msra.mxu2 %v832_v7 }
  0xc8   : > { %863 = vmatpush.bf16.msra.mxu3 %v841_v40  ;;  %595 = vmatpush.bf16.msra.mxu1 %v841_v40 }
  0xca   : > { %405 = vmatmul.bf16.vlgmr.msra.gmra.mxu0 %v830_v8  ;;  %410 = vmatmul.bf16.vlgmr.msra.gmra.mxu2 %v831_v9 }
  0xcc   : > { %864 = vmatpush.bf16.msra.mxu3 %v840_v45  ;;  %596 = vmatpush.bf16.msra.mxu1 %v840_v45 }
 0x147   : > { %v406_v11 = vpop.f32.mrf.mxu0 }
 0x148   : > { %v407_v12 = vadd.f32 %v1025_v10, %v406_v11 }
 0x14a   : > { %v1703_v13 = vmax.f32 %v407_v12, 0.0 }
 0x14c   : > { %420 = vadd.xlane.f32.xlu2 %v1703_v13  ;;  %v432_v25 = vmul.f32 %v1703_v13, %v1703_v13 }
 0x14d   : > { %v411_v14 = vpop.f32.mrf.mxu2 }
 0x14e   : > { %v412_v15 = vadd.f32 %v1025_v10, %v411_v14 }
 0x14f   : > { %v408_v16 = vpop.f32.mrf.mxu0 }
 0x150   : > { %v1706_v17 = vmax.f32 %v412_v15, 0.0  ;;  %v409_v18 = vadd.f32 %v1025_v10, %v408_v16 }
 0x152   : > { %v1708_v19 = vmax.f32 %v409_v18, 0.0  ;;  %424 = vadd.xlane.f32.xlu0 %v1706_v17  ;;  %v434_v20 = vmul.f32 %v1706_v17, %v1706_v17 }
 0x154   : > { %440 = vadd.xlane.f32.xlu1 %v434_v20  ;;  %422 = vadd.xlane.f32.xlu2 %v1708_v19  ;;  %v433_v26 = vmul.f32 %v1708_v19, %v1708_v19 }
 0x155   : > { %v413_v21 = vpop.f32.mrf.mxu2 }
 0x156   : > { %v414_v22 = vadd.f32 %v1025_v10, %v413_v21 }
 0x158   : > { %v1714_v23 = vmax.f32 %v414_v22, 0.0 }
 0x15a   : > { %426 = vadd.xlane.f32.xlu0 %v1714_v23  ;;  %v435_v24 = vmul.f32 %v1714_v23, %v1714_v23 }
 0x15c   : > { %442 = vadd.xlane.f32.xlu1 %v435_v24  ;;  %v1026_v24 = vld [vmem:[#allocation9 + $0x1] ss:$0 sm:$0xff] }
 0x162   : > { %436 = vadd.xlane.f32.xlu0 %v432_v25 }
 0x164   : > { %438 = vadd.xlane.f32.xlu1 %v433_v26 }
 0x1bf   : > { %v421_v38 = vpop.xlane.xlu2 %420 }
 0x1c0   : > { %v1731_v51 = vmul.f32 0.015625, %v421_v38 }
 0x1c2   : > { %v448_v55 = vmul.f32 %v1731_v51, %v1731_v51 }
 0x1c5   : > { %v425_v32 = vpop.xlane.xlu0 %424 }
 0x1c6   : > { %v1723_v33 = vmul.f32 0.015625, %v425_v32 }
 0x1c7   : > { %v441_v35 = vpop.xlane.xlu1 %440  ;;  %v423_v49 = vpop.xlane.xlu2 %422 }
 0x1c8   : > { %v450_v36 = vmul.f32 %v1723_v33, %v1723_v33  ;;  %v446_v37 = vmul.f32 0.015625, %v441_v35  ;;  %v1735_v56 = vmul.f32 0.015625, %v423_v49  ;;  %v462_v15 = vsub.f32 %v1706_v17, %v1723_v33  ;;  %v1027_v35 = vld [vmem:[#allocation9 + $0x2] ss:$0 sm:$0xff] }
 0x1ca   : > { %v454_v39 = vsub.f32 %v446_v37, %v450_v36  ;;  %v449_v61 = vmul.f32 %v1735_v56, %v1735_v56 }
 0x1cc   : > { %v458_v41 = vmax.f32 %v454_v39, 0.0  ;;  %v460_v39 = vsub.f32 %v1703_v13, %v1731_v51 }
 0x1cd   : > { %v427_v42 = vpop.xlane.xlu0 %426 }
 0x1ce   : > { %v466_v43 = vadd.f32 1e-05, %v458_v41  ;;  %v1727_v44 = vmul.f32 0.015625, %v427_v42 }
 0x1cf   : > { %v443_v46 = vpop.xlane.xlu1 %442 }
 0x1d0   : > { %1029 = vrsqrt.f32 %v466_v43  ;;  %v451_v47 = vmul.f32 %v1727_v44, %v1727_v44  ;;  %v447_v48 = vmul.f32 0.015625, %v443_v46  ;;  %vm494_vm1 = vweird.f32 %v466_v43 }
 0x1d1   : > { %v463_v28 = vsub.f32 %v1714_v23, %v1727_v44 }
 0x1d2   : > { %v455_v50 = vsub.f32 %v447_v48, %v451_v47 }
 0x1d4   : > { %v459_v52 = vmax.f32 %v455_v50, 0.0 }
 0x1d5   : > { %v437_v53 = vpop.xlane.xlu0 %436 }
 0x1d6   : > { %v1030_v54 = vpop.eup %1029  ;;  %v444_v57 = vmul.f32 0.015625, %v437_v53  ;;  %v467_v59 = vadd.f32 1e-05, %v459_v52  ;;  %v1028_v52 = vld [vmem:[#allocation9 + $0x3] ss:$0 sm:$0xff] }
 0x1d7   : > { %v489_v58 = vmul.f32 %v1030_v54, %v466_v43  ;;  %v439_v60 = vpop.xlane.xlu1 %438  ;;  %vm495_vm0 = vweird.f32 %v1030_v54  ;;  %v461_v43 = vsub.f32 %v1708_v19, %v1735_v56 }
 0x1d8   : > { %v452_v62 = vsub.f32 %v444_v57, %v448_v55  ;;  %v445_v63 = vmul.f32 0.015625, %v439_v60  ;;  %1031 = vrsqrt.f32 %v467_v59  ;;  %vm496_vm2 = vmor %vm494_vm1, %vm495_vm0  ;;  %vm504_vm4 = vweird.f32 %v467_v59 }
 0x1d9   : > { %v490_v0 = vmul.f32 %v1030_v54, %v489_v58 }
 0x1da   : > { %v456_v1 = vmax.f32 %v452_v62, 0.0  ;;  %v453_v2 = vsub.f32 %v445_v63, %v449_v61 }
 0x1db   : > { %v491_v3 = vmul.f32 0.5, %v490_v0 }
 0x1dc   : > { %v464_v4 = vadd.f32 1e-05, %v456_v1  ;;  %v457_v5 = vmax.f32 %v453_v2, 0.0 }
 0x1dd   : > { %v492_v6 = vsub.f32 1.5, %v491_v3 }
 0x1de   : > { %1033 = vrsqrt.f32 %v464_v4  ;;  %v465_v7 = vadd.f32 1e-05, %v457_v5  ;;  %v1032_v8 = vpop.eup %1031  ;;  %vm474_vm7 = vweird.f32 %v464_v4 }
 0x1df   : > { %v493_v9 = vmul.f32 %v1030_v54, %v492_v6  ;;  %v499_v10 = vmul.f32 %v1032_v8, %v467_v59  ;;  %vm505_vm3 = vweird.f32 %v1032_v8 }
 0x1e0   : > { %1035 = vrsqrt.f32 %v465_v7  ;;  %vm506_vm5 = vmor %vm504_vm4, %vm505_vm3  ;;  %vm484_vm10 = vweird.f32 %v465_v7 }
 0x1e1   : > { %v500_v11 = vmul.f32 %v1032_v8, %v499_v10  ;;  %v497_v12 = vsel %vm496_vm2, %v1030_v54, %v493_v9 }
 0x1e2   : > { %v510_v22 = vmul.f32 %v497_v12, %v462_v15 }
 0x1e3   : > { %v501_v16 = vmul.f32 0.5, %v500_v11 }
 0x1e4   : > { %v1034_v14 = vpop.eup %1033  ;;  %v515_v32 = vmul.f32 %v1026_v24, %v510_v22 }
 0x1e5   : > { %v469_v18 = vmul.f32 %v1034_v14, %v464_v4  ;;  %v502_v21 = vsub.f32 1.5, %v501_v16  ;;  %vm475_vm6 = vweird.f32 %v1034_v14 }
 0x1e6   : > { %v1036_v20 = vpop.eup %1035  ;;  %vm476_vm9 = vmor %vm474_vm7, %vm475_vm6  ;;  %v520_v40 = vadd.f32 %v1027_v35, %v515_v32 }
 0x1e7   : > { %v470_v25 = vmul.f32 %v1034_v14, %v469_v18  ;;  %v479_v26 = vmul.f32 %v1036_v20, %v465_v7  ;;  %v503_v27 = vmul.f32 %v1032_v8, %v502_v21  ;;  %vm485_vm8 = vweird.f32 %v1036_v20 }
 0x1e8   : > { %vm486_vm11 = vmor %vm484_vm10, %vm485_vm8 }
 0x1e9   : > { %v471_v29 = vmul.f32 0.5, %v470_v25  ;;  %v480_v30 = vmul.f32 %v1036_v20, %v479_v26  ;;  %v507_v31 = vsel %vm506_vm5, %v1032_v8, %v503_v27 }
 0x1ea   : > { %v511_v34 = vmul.f32 %v507_v31, %v463_v28 }
 0x1eb   : > { %v472_v17 = vsub.f32 1.5, %v471_v29  ;;  %v481_v33 = vmul.f32 0.5, %v480_v30 }
 0x1ec   : > { %v516_v38 = vmul.f32 %v1026_v24, %v511_v34 }
 0x1ed   : > { %v473_v36 = vmul.f32 %v1034_v14, %v472_v17  ;;  %v482_v37 = vsub.f32 1.5, %v481_v33 }
 0x1ee   : > { %v521_v41 = vadd.f32 %v1027_v35, %v516_v38 }
 0x1ef   : > { %v483_v23 = vmul.f32 %v1036_v20, %v482_v37  ;;  %v477_v42 = vsel %vm476_vm9, %v1034_v14, %v473_v36 }
 0x1f0   : > { %v508_v44 = vmul.f32 %v477_v42, %v460_v39  ;;  %v523_v45 = vpack.c.bf16 %v521_v41, %v520_v40 }
 0x1f1   : > { %v487_v46 = vsel %vm486_vm11, %v1036_v20, %v483_v23 }
 0x1f2   : > { %v509_v47 = vmul.f32 %v487_v46, %v461_v43  ;;  %v513_v48 = vmul.f32 %v1026_v24, %v508_v44  ;;  %602 = vmatmul.bf16.vlgmr.msra.gmra.mxu3 %v523_v45 }
 0x1f4   : > { %v514_v49 = vmul.f32 %v1026_v24, %v509_v47  ;;  %v518_v13 = vadd.f32 %v1027_v35, %v513_v48 }
 0x1f6   : > { %v519_v50 = vadd.f32 %v1027_v35, %v514_v49 }
 0x1f8   : > { %v522_v51 = vpack.c.bf16 %v519_v50, %v518_v13 }
 0x1fa   : > { %597 = vmatmul.bf16.vlgmr.msra.gmra.mxu1 %v522_v51 }
 0x275   : > { %v603_v53 = vpop.f32.mrf.mxu3 }
 0x276   : > { %v604_v54 = vadd.f32 %v1028_v52, %v603_v53 }
 0x277   : > { %v598_v55 = vpop.f32.mrf.mxu1 }
 0x278   : > { %v599_v19 = vadd.f32 %v1028_v52, %v598_v55  ;;  %610 = vst [vmem:[%s306_s19 + $0x10] sm:$0xff] %v604_v54 }
 0x27a   : > { %608 = vst [vmem:[%s306_s19] sm:$0xff] %v599_v19 }
 0x27d   : > { %v605_v56 = vpop.f32.mrf.mxu3 }
 0x27e   : > { %v606_v57 = vadd.f32 %v1028_v52, %v605_v56 }
 0x27f   : > { %v600_v58 = vpop.f32.mrf.mxu1 }
 0x280   : > { %v601_v59 = vadd.f32 %v1028_v52, %v600_v58  ;;  %611 = vst [vmem:[%s306_s19 + $0x18] sm:$0xff] %v606_v57 }
 0x282   : > { %609 = vst [vmem:[%s306_s19 + $0x8] sm:$0xff] %v601_v59 }
 0x283   : > { %1196 = shalt.err (!%p1193_p7)
}
 0x284   : > { %s1329_s3 = smov 128   ;;  %s1330_s7 = smov 8  }
 0x285   : > { %879 = dma.vmem_to_hbm [thread:$0]  (%p1629_p9), %s626_s30, 512, %s628_s21, %s613_s22, %s1329_s3, %s1329_s3, %s1330_s7  }
 0x286 PF: > { %s1907_s13 = sld [smem:[#allocation28_spill]]  ;;  %p1910_p1 = scmp.ge.s32.totalorder %s1321_s8, 2 }
 0x287   : > { %s1908_s27 = sld [smem:[#allocation38_spill]] }
 0x28c   : > { %s642_s28 = sand.u32 1, %s1907_s13  }
 0x28d   : > { %p1909_p8 = scmp.ne.s32.totalorder %s1908_s27, 0  ;;  %s643_s5 = scalar_lea.sflag [#allocation6], %s642_s28 }
 0x28f   : > { %p902_p2 = pnand %p1910_p1, %p1909_p8 }
 0x291   : > { %p903_p6 = pneg %p902_p2 }
 0x293   : > { %1268 = dma.done.wait (%p903_p6), %s643_s5, 512  }
 0x294   : > { %1270 = vsyncadd (%p903_p6), %s643_s5, 4294966784  ;;  %s1911_s8 = sld [smem:[#allocation36_spill]]  ;;  %s1918_s23 = smov %s1281_s24 }
 0x295   : > { %s1912_s22 = sld [smem:[#allocation25_spill]]  ;;  %s1919_s24 = smov %s1649_s17 }
 0x296   : > { %s1913_s25 = sld [smem:[#allocation26_spill]]  ;;  %s1920_s0 = smov %s1293_s26 }
 0x297   : > { %s1914_s27 = sld [smem:[#allocation27_spill]]  ;;  %s1921_s26 = smov %s1646_s10 }
 0x298   : > { %s1915_s19 = sld [smem:[#allocation29_spill]]  ;;  %s1922_s28 = smov %s1305_s29 }
 0x299   : > { %s1916_s7 = sld [smem:[#allocation37_spill]]  ;;  %s1923_s29 = smov %s1643_s9 }
 0x29a   : > { %p28_p9 = scmp.ge.s32.totalorder %s1911_s8, 4   ;;  %s1924_s30 = smov %s1313_s6 }
 0x29c   :  { %30 = sbr.rel (!%p28_p9) target bundleno = 21 (0x15), region = 96 }
 0x29e   : > { %s1925_s6 = smov %s1915_s19 }
 0x2a1   :  { %649 = vsyncpa [#allocation5], 1 }
 0x2a2   :  { %651 = vsyncpa [#allocation5 + $0x1], 1 }
 0x2a3   :  { %652 = vsyncpa [#allocation8], 1 }
 0x2a4   :  { %653 = vsyncpa [#allocation11], 1 }
 0x2a5   :  { %654 = vsyncpa [#allocation6], 1 }
 0x2a6   :  { %656 = vsyncpa [#allocation6 + $0x1], 1 }

// kernel: tpu_custom_call.1
= control target key start
LH: loop header
LB: loop body
LE: loop exit
PB: predicated region body
PF: predicated region fallthrough
CT: control target
= control target key end

     0   :  { %s1399_s21 = smov [#allocation3]   ;;  %s1925_s0 = inlined_call_operand.hbm [shape: s32[2], index: 0, kind: input, shape index: {}]   ;;  %s1926_s1 = inlined_call_operand.hbm [shape: bf16[64,128], index: 1, kind: input, shape index: {}]   ;;  %s1927_s2 = inlined_call_operand.hbm [shape: bf16[2,128,128], index: 2, kind: input, shape index: {}]   ;;  %s1928_s3 = inlined_call_operand.hbm [shape: f32[2,4,128], index: 3, kind: input, shape index: {}]   ;;  %s1929_s4 = inlined_call_operand.hbm [shape: bf16[2,128,128], index: 4, kind: input, shape index: {}]   ;;  %s1930_s5 = inlined_call_operand.hbm [shape: f32[64,128], index: 5, kind: output, shape index: {}]  }
   0x1   :  { %1953 = sst [smem:[#allocation36_spill]] %s1926_s1  ;;  %s11_s20 = sshll.u32 %s1925_s0, 4  ;;  %s12_s20 = int_to_ptr.hbm [resolvable:$true] %s11_s20 }
   0x2   :  { %1954 = sst [smem:[#allocation37_spill]] %s1927_s2 }
   0x3   :  { %1955 = sst [smem:[#allocation38_spill]] %s1928_s3 }
   0x4   :  { %1956 = sst [smem:[#allocation39_spill]] %s1929_s4 }
   0x5   :  { %1957 = sst [smem:[#allocation40_spill]] %s1930_s5 }
   0x6   :  { %14 = dma.hbm_to_smem %s12_s20, 16, %s1399_s21, [#allocation2] }
   0x7   :  { %1325 = dma.done.wait [#allocation2], 16 }
   0x8   :  { %1326 = vsyncadd [#allocation2], 4294967280 }
   0x9   :  { %17 = sfence }
   0xa   :  { %18 = vsyncpa [#allocation5], 0 }
   0xb   :  { %20 = vsyncpa [#allocation5 + $0x1], 0 }
   0xc   :  { %21 = vsyncpa [#allocation8], 0 }
   0xd   :  { %23 = vsyncpa [#allocation8 + $0x1], 0 }
   0xe   :  { %24 = vsyncpa [#allocation11], 0 }
   0xf   :  { %26 = vsyncpa [#allocation11 + $0x1], 0 }
  0x10   :  { %27 = vsyncpa [#allocation6], 0 }
  0x11   :  { %29 = vsyncpa [#allocation6 + $0x1], 0  ;;  %s1437_s22 = smov 0   ;;  %s1439_s23 = smov 0  }
  0x12   :  { %s1441_s24 = smov 0   ;;  %s1443_s0 = smov 0  }
  0x13   :  { %s1445_s25 = smov 0   ;;  %s1447_s26 = smov 0  }
  0x14   :  { %s1449_s27 = smov 0   ;;  %s1451_s28 = smov 0  }
  0x15   :  { %s1453_s29 = smov 0   ;;  %s1455_s30 = smov 0  }
  0x16   :  { %s1457_s6 = smov 0   ;;  %s1459_s7 = smov 0  }
  0x17   :  { %s1461_s8 = smov 0  }
  0x18 LB: > { %1958 = sst [smem:[#allocation25_spill]] %s1369_s26  ;;  %s1501_s9 = sadd.s32 4294967295, %s1397_s8   ;;  %s1397_s8 = sphi %s1461_s8, %s2014_s8   ;;  %s1393_s7 = sphi %s1459_s7, %s2022_s7   ;;  %s1389_s6 = sphi %s1457_s6, %s2030_s6   ;;  %s1385_s30 = sphi %s1455_s30, %s2029_s30   ;;  %s1381_s29 = sphi %s1453_s29, %s2020_s29   ;;  %s1377_s28 = sphi %s1451_s28, %s2019_s28   ;;  %s1373_s27 = sphi %s1449_s27, %s2018_s27   ;;  %s1369_s26 = sphi %s1447_s26, %s2017_s26   ;;  %s1365_s25 = sphi %s1445_s25, %s2028_s25   ;;  %s1361_s0 = sphi %s1443_s0, %s2027_s0   ;;  %s1357_s24 = sphi %s1441_s24, %s2026_s24   ;;  %s1353_s23 = sphi %s1439_s23, %s2025_s23   ;;  %s1349_s22 = sphi %s1437_s22, %s2024_s22  }
  0x19   : > { %1959 = sst [smem:[#allocation26_spill]] %s1377_s28  ;;  %s1504_s10 = sadd.s32 1, %s1397_s8  }
  0x1a   : > { %1960 = sst [smem:[#allocation27_spill]] %s1381_s29  ;;  %p1946_p0 = scmp.eq.s32.totalorder %s1397_s8, 0 }
  0x1b   : > { %1961 = sst [smem:[#allocation28_spill]] %s1393_s7  ;;  %p1945_p1 = scmp.eq.s32.totalorder %s1501_s9, 0 }
  0x1c   : > { %1962 = sst [smem:[#allocation29_spill]] %s1504_s10  ;;  %s70_s12 = sadd.s32 1, %s1381_s29 }
  0x1d   : > { %s65_s11 = sld [smem:[#allocation3 + %s1397_s8]]  ;;  %p77_p2 = scmp.ne.s32.totalorder %s1381_s29, %s1377_s28 }
  0x1e   : > { %s66_s13 = sld [smem:[#allocation3 + %s1504_s10]]  ;;  %p83_p3 = scmp.ne.s32.totalorder %s1377_s28, %s1373_s27 }
  0x1f   : > { %p1517_p5 = por %p77_p2, %p1946_p0  ;;  %p1938_p6 = scmp.lt.s32.totalorder %s1397_s8, 2 }
  0x20   : > { %p1524_p7 = por %p83_p3, %p1945_p1  ;;  %s211_s16 = sand.u32 1, %s1397_s8  }
  0x21   : > { %s213_s17 = sand.u32 1, %s1381_s29   ;;  %p1548_p9 = pnand %p1938_p6, %p1517_p5 }
  0x22   : > { %s1964_s15 = scalar_select %p1524_p7, 1, 0 }
  0x23   : > { %s822_s19 = sshll.u32 %s213_s17, 6  ;;  %p830_p10 = scmp.ge.s32.totalorder %s1397_s8, 1 }
  0x24   : > { %1965 = sst [smem:[#allocation30_spill]] %s1964_s15  ;;  %s67_s18 = ssub.s32 %s65_s11, %s66_s13 }
  0x25   : > { %p68_p8 = scmp.eq.s32.totalorder %s67_s18, 0  ;;  %s215_s5 = scalar_lea.vmem [#allocation7], %s822_s19 }
  0x26   : > { %s952_s20 = scalar_select %p1517_p5, [#allocation3], [#allocation13] }
  0x27   : > { %s1533_s21 = scalar_select %p68_p8, %s1381_s29, %s70_s12  }
  0x28   : > { %s953_s27 = scalar_select %p1517_p5, %s1397_s8, 0 }
  0x29   : > { %1966 = sst [smem:[#allocation31_spill]] %s1533_s21  ;;  %s2032_s20 = smov (!%p1938_p6, %s952_s20), [#allocation16] }
  0x2a   : > { %s2034_s27 = smov (!%p1938_p6, %s953_s27), 0  ;;  %s1542_s15 = sshll.u32 %s215_s5, 4 }
  0x2b   : > { %1967 = sst [smem:[#allocation32_spill]] %s1542_s15  ;;  %p275_p11 = scmp.lt.s32.totalorder %s1397_s8, 3 }
  0x2c   : > { %s216_s13 = sld [smem:[%s2032_s20 + %s2034_s27]]  ;;  %s816_s18 = sadd.s32 4294967294, %s1397_s8  }
  0x2d   : > { %p1555_p12 = pnand %p830_p10, %p275_p11  ;;  %s1970_s2 = sld [smem:[#allocation37_spill]] }
  0x2e   : > { %s39_s21 = ssub.s32 %s1397_s8, %s1504_s10  ;;  %s42_s20 = sadd.s32 1, %s1393_s7 }
  0x2f   : > { %p1565_p13 = scmp.eq.s32.totalorder %s39_s21, 0  ;;  %s1570_s27 = scalar_lea.sflag [#allocation8], %s211_s16 }
  0x30   : > { %p1129_p3 = pneg %p1548_p9 }
  0x32   : > { %s914_s17 = sshll.u32 %s216_s13, 6 }
  0x33   : > { %s221_s14 = scalar_lea.hbm %s1970_s2, %s914_s17  ;;  %s1132_s5 = scalar_lea.hbm %s1970_s2, 128 }
  0x34   : > { %s222_s29 = sshll.u32 %s221_s14, 4  ;;  %s223_s29 = int_to_ptr.hbm [resolvable:$true] %s222_s29 }
  0x35   : > { %s1125_s15 = sshra.s32 %s223_s29, 4  ;;  %s1126_s15 = int_to_ptr.hbm [resolvable:$true] %s1125_s15 }
  0x36   : > { %s1127_s4 = scalar_lea.hbm %s1126_s15, 64  ;;  %p1133_p10 = scmp.lt.s32.totalorder %s1126_s15, %s1970_s2 }
  0x37   : > { %p1128_p2 = scmp.ne.s32.totalorder %s1126_s15, %s1127_s4  ;;  %p1134_p11 = scmp.lt.s32.totalorder %s1132_s5, %s1127_s4 }
  0x39   : > { %p1130_p5 = pnand %p1129_p3, %p1128_p2  ;;  %p1135_p4 = por %p1134_p11, %p1133_p10 }
  0x3b   : > { %p1131_p8 = pneg %p1130_p5 }
  0x3d   : > { %p1136_p6 = pnand %p1135_p4, %p1131_p8 }
  0x3f   : > { %1139 = shalt.err (!%p1136_p6)
}
  0x40   : > { %s1939_s16 = smov 64   ;;  %s1972_s14 = sld [smem:[#allocation32_spill]] }
  0x41   : > { %s1941_s15 = smov 4   ;;  %p49_p4 = scmp.ne.s32.totalorder %s1393_s7, %s1389_s6 }
  0x42   : > { %s1591_s13 = scalar_select %p1565_p13, %s1393_s7, %s42_s20  }
  0x43   : > { %p55_p6 = scmp.ne.s32.totalorder %s1389_s6, %s1385_s30  ;;  %p163_p2 = scmp.eq.s32.totalorder %s1501_s9, 1 }
  0x44   : > { %1974 = sst [smem:[#allocation33_spill]] %s1591_s13  ;;  %p169_p3 = scmp.eq.s32.totalorder %s816_s18, 1 }
  0x45   : > { %p1600_p5 = por %p1946_p0, %p49_p4  ;;  %p1606_p8 = por %p1945_p1, %p55_p6 }
  0x46   : > { %s1973_s4 = int_to_ptr.vmem [resolvable:$true] %s1972_s14  ;;  %p1614_p13 = por %p169_p3, %p55_p6 }
  0x47   : > { %975 = dma.hbm_to_vmem [thread:$0]  (!%p1548_p9), %s223_s29, 1024, %s1973_s4, %s1570_s27, %s1939_s16, %s1939_s16, %s1941_s15  }
  0x48   : > { %p1610_p9 = por %p163_p2, %p49_p4  ;;  %s189_s18 = sand.u32 1, %s1393_s7  }
  0x49   : > { %s1978_s29 = scalar_select %p1614_p13, 1, 0 }
  0x4a   : > { %s1977_s28 = scalar_select %p1610_p9, 1, 0 }
  0x4b   : > { %1979 = sst [smem:[#allocation32_spill]] %s1978_s29  ;;  %s913_s20 = sshll.u32 %s1397_s8, 4 }
  0x4c   : > { %s819_s5 = sshll.u32 %s189_s18, 4  ;;  %s1980_s1 = sld [smem:[#allocation36_spill]] }
  0x4d   : > { %s193_s16 = scalar_lea.vmem [#allocation4], %s819_s5  ;;  %p1981_p10 = scmp.lt.s32.totalorder %s1397_s8, 2 }
  0x4e   : > { %s201_s15 = sshll.u32 %s193_s16, 4  ;;  %s190_s13 = scalar_lea.sflag [#allocation5], %s189_s18  ;;  %s202_s15 = int_to_ptr.vmem [resolvable:$true] %s201_s15 }
  0x4f   : > { %p1627_p11 = pnand %p1981_p10, %p1600_p5 }
  0x51   : > { %p1159_p6 = pneg %p1627_p11 }
  0x52   : > { %s198_s14 = scalar_lea.hbm %s1980_s1, %s913_s20  ;;  %s1162_s5 = scalar_lea.hbm %s1980_s1, 32 }
  0x53   : > { %s199_s4 = sshll.u32 %s198_s14, 4  ;;  %s200_s4 = int_to_ptr.hbm [resolvable:$true] %s199_s4 }
  0x54   : > { %s1155_s7 = sshra.s32 %s200_s4, 4  ;;  %s1156_s7 = int_to_ptr.hbm [resolvable:$true] %s1155_s7 }
  0x55   : > { %s1157_s29 = scalar_lea.hbm %s1156_s7, 16  ;;  %p1163_p5 = scmp.lt.s32.totalorder %s1156_s7, %s1980_s1 }
  0x56   : > { %p1158_p4 = scmp.ne.s32.totalorder %s1156_s7, %s1157_s29  ;;  %p1164_p10 = scmp.lt.s32.totalorder %s1162_s5, %s1157_s29 }
  0x58   : > { %p1160_p2 = pnand %p1159_p6, %p1158_p4  ;;  %p1165_p1 = por %p1164_p10, %p1163_p5 }
  0x5a   : > { %p1161_p3 = pneg %p1160_p2 }
  0x5c   : > { %p1166_p0 = pnand %p1165_p1, %p1161_p3 }
  0x5e   : > { %1169 = shalt.err (!%p1166_p0)
}
  0x5f   : > { %s1983_s18 = smov 4   ;;  %s1984_s19 = smov 64  }
  0x60   : > { %970 = dma.hbm_to_vmem [thread:$0]  (!%p1627_p11), %s200_s4, 256, %s202_s15, %s190_s13, %s1984_s19, %s1984_s19, %s1983_s18  }
  0x61   : > { %s93_s7 = sld [smem:[#allocation3 + %s1397_s8]]  ;;  %p105_p0 = scmp.ne.s32.totalorder %s1369_s26, %s1365_s25 }
  0x62   : > { %s94_s29 = sld [smem:[#allocation3 + %s1504_s10]]  ;;  %p111_p1 = scmp.ne.s32.totalorder %s1365_s25, %s1361_s0 }
  0x63   : > { %s236_s2 = sand.u32 1, %s1369_s26   ;;  %p1985_p4 = scmp.eq.s32.totalorder %s1397_s8, 0 }
  0x64   : > { %s825_s15 = sshll.u32 %s236_s2, 2  ;;  %p1987_p11 = scmp.eq.s32.totalorder %s1501_s9, 0 }
  0x65   : > { %p1653_p6 = por %p105_p0, %p1985_p4  ;;  %s98_s16 = sadd.s32 1, %s1369_s26 }
  0x66   : > { %p1659_p2 = por %p111_p1, %p1987_p11  ;;  %s238_s5 = scalar_lea.vmem [#allocation9], %s825_s15 }
  0x67   : > { %s955_s0 = scalar_select %p1653_p6, [#allocation3], [#allocation14] }
  0x68   : > { %s1988_s13 = scalar_select %p1659_p2, 1, 0 }
  0x69   : > { %s956_s4 = scalar_select %p1653_p6, %s1397_s8, 0 }
  0x6a   : > { %s95_s20 = ssub.s32 %s93_s7, %s94_s29  ;;  %s1669_s17 = sshll.u32 %s238_s5, 4  ;;  %s248_s17 = int_to_ptr.vmem [resolvable:$true] %s1669_s17 }
  0x6b   : > { %p96_p3 = scmp.eq.s32.totalorder %s95_s20, 0  ;;  %p1989_p5 = scmp.lt.s32.totalorder %s1397_s8, 2 }
  0x6c   : > { %s121_s29 = sld [smem:[#allocation3 + %s1397_s8]]  ;;  %p133_p4 = scmp.ne.s32.totalorder %s1357_s24, %s1353_s23 }
  0x6d   : > { %s2036_s0 = smov (!%p1989_p5, %s955_s0), [#allocation17]  ;;  %p1991_p10 = pmov %p1989_p5 }
  0x6e   : > { %s1674_s21 = scalar_select %p96_p3, %s1369_s26, %s98_s16  }
  0x6f   : > { %s2038_s4 = smov (!%p1991_p10, %s956_s4), 0  ;;  %p1992_p0 = pmov %p1989_p5 }
  0x70   : > { %1990 = sst [smem:[#allocation34_spill]] %s1674_s21  ;;  %p139_p11 = scmp.ne.s32.totalorder %s1353_s23, %s1349_s22 }
  0x71   : > { %p1682_p1 = pnand %p1992_p0, %p1653_p6  ;;  %s239_s7 = sld [smem:[%s2036_s0 + %s2038_s4]] }
  0x72   : > { %s122_s15 = sld [smem:[#allocation3 + %s1504_s10]]  ;;  %s1950_s21 = sand.u32 1, %s1357_s24  }
  0x73   : > { %s1994_s3 = sld [smem:[#allocation38_spill]]  ;;  %p1995_p3 = scmp.eq.s32.totalorder %s1501_s9, 0 }
  0x74   : > { %p1997_p6 = scmp.eq.s32.totalorder %s1397_s8, 0  ;;  %p1189_p13 = pneg %p1682_p1 }
  0x75   : > { %p1699_p5 = por %p139_p11, %p1995_p3 }
  0x76   : > { %p1705_p10 = por %p133_p4, %p1997_p6 }
  0x77   : > { %s826_s20 = sshll.u32 %s239_s7, 2 }
  0x79   : > { %s243_s16 = scalar_lea.hbm %s1994_s3, %s826_s20  ;;  %s1192_s20 = scalar_lea.hbm %s1994_s3, 8 }
  0x7a   : > { %s245_s26 = sshll.u32 %s243_s16, 4  ;;  %s246_s26 = int_to_ptr.hbm [resolvable:$true] %s245_s26 }
  0x7b   : > { %s1185_s22 = sshra.s32 %s246_s26, 4  ;;  %s1186_s22 = int_to_ptr.hbm [resolvable:$true] %s1185_s22 }
  0x7c   : > { %s1187_s4 = scalar_lea.hbm %s1186_s22, 4  ;;  %p1193_p11 = scmp.lt.s32.totalorder %s1186_s22, %s1994_s3 }
  0x7d   : > { %p1188_p0 = scmp.ne.s32.totalorder %s1186_s22, %s1187_s4  ;;  %p1194_p4 = scmp.lt.s32.totalorder %s1192_s20, %s1187_s4 }
  0x7f   : > { %p1190_p9 = pnand %p1189_p13, %p1188_p0  ;;  %p1195_p3 = por %p1194_p4, %p1193_p11 }
  0x81   : > { %p1191_p2 = pneg %p1190_p9 }
  0x83   : > { %p1196_p6 = pnand %p1195_p3, %p1191_p2 }
  0x85   : > { %1199 = shalt.err (!%p1196_p6)
}
  0x86   : > { %980 = dma.hbm_to_vmem [thread:$0]  (!%p1682_p1), %s246_s26, 64, %s248_s17, %s1570_s27  }
  0x87   : > { %s123_s1 = ssub.s32 %s121_s29, %s122_s15  ;;  %s126_s22 = sadd.s32 1, %s1357_s24 }
  0x88   : > { %p124_p9 = scmp.eq.s32.totalorder %s123_s1, 0  ;;  %s827_s4 = sshll.u32 %s1950_s21, 6 }
  0x89   : > { %s958_s2 = scalar_select %p1705_p10, [#allocation3], [#allocation15] }
  0x8a   : > { %s1726_s7 = scalar_select %p124_p9, %s1357_s24, %s126_s22  }
  0x8b   : > { %s959_s20 = scalar_select %p1705_p10, %s1397_s8, 0 }
  0x8c   : > { %1999 = sst [smem:[#allocation35_spill]] %s1726_s7  ;;  %p2000_p13 = scmp.lt.s32.totalorder %s1397_s8, 2 }
  0x8d   : > { %s258_s17 = scalar_lea.vmem [#allocation10], %s827_s4  ;;  %s2004_s1 = sld [smem:[#allocation39_spill]] }
  0x8e   : > { %s2040_s2 = smov (!%p2000_p13, %s958_s2), [#allocation18]  ;;  %p2001_p2 = pmov %p2000_p13 }
  0x8f   : > { %s267_s29 = sshll.u32 %s258_s17, 4  ;;  %s2005_s3 = sand.u32 1, %s1357_s24   ;;  %s268_s29 = int_to_ptr.vmem [resolvable:$true] %s267_s29 }
  0x90   : > { %s2042_s20 = smov (!%p2001_p2, %s959_s20), 0  ;;  %p2002_p0 = pmov %p2001_p2 }
  0x91   : > { %s259_s27 = sld [smem:[%s2040_s2 + %s2042_s20]]  ;;  %s255_s7 = scalar_lea.sflag [#allocation11], %s2005_s3 }
  0x92   : > { %p1739_p11 = pnand %p2002_p0, %p1705_p10 }
  0x93   : > { %s1222_s20 = scalar_lea.hbm %s2004_s1, 128 }
  0x94   : > { %p1219_p10 = pneg %p1739_p11 }
  0x97   : > { %s915_s15 = sshll.u32 %s259_s27, 6 }
  0x98   : > { %s264_s22 = scalar_lea.hbm %s2004_s1, %s915_s15 }
  0x99   : > { %s265_s21 = sshll.u32 %s264_s22, 4  ;;  %s266_s21 = int_to_ptr.hbm [resolvable:$true] %s265_s21 }
  0x9a   : > { %s1215_s0 = sshra.s32 %s266_s21, 4  ;;  %s1216_s0 = int_to_ptr.hbm [resolvable:$true] %s1215_s0 }
  0x9b   : > { %s1217_s10 = scalar_lea.hbm %s1216_s0, 64  ;;  %p1223_p6 = scmp.lt.s32.totalorder %s1216_s0, %s2004_s1 }
  0x9c   : > { %p1218_p1 = scmp.ne.s32.totalorder %s1216_s0, %s1217_s10  ;;  %p1224_p9 = scmp.lt.s32.totalorder %s1222_s20, %s1217_s10 }
  0x9e   : > { %p1220_p4 = pnand %p1219_p10, %p1218_p1  ;;  %p1225_p13 = por %p1224_p9, %p1223_p6 }
  0xa0   : > { %p1221_p3 = pneg %p1220_p4 }
  0xa2   : > { %p1226_p2 = pnand %p1225_p13, %p1221_p3 }
  0xa4   : > { %1229 = shalt.err (!%p1226_p2)
}
  0xa5   : > { %985 = dma.hbm_to_vmem [thread:$0]  (!%p1739_p11), %s266_s21, 1024, %s268_s29, %s255_s7, %s1984_s19, %s1984_s19, %s1983_s18  }
  0xa6   : > { %279 = sbr.rel (%p1555_p12) target bundleno = 666 (0x29a), region = 36  ;;  %s1764_s3 = sand.u32 (!%p1555_p12), 1, %s1389_s6  }
  0xa7   : > { %s831_s15 = sshll.u32 (!%p1555_p12), %s1764_s3, 4  ;;  %s282_s10 = scalar_lea.sflag (!%p1555_p12), [#allocation5], %s1764_s3 }
  0xa8   : > { %s1768_s5 = scalar_lea.vmem (!%p1555_p12), [#allocation4], %s831_s15 }
  0xab   : > { %1328 = dma.done.wait (%p1606_p8), %s282_s10, 256  }
  0xac   : > { %1330 = vsyncadd (%p1606_p8), %s282_s10, 4294967040  ;;  %s2006_s18 = sld [smem:[#allocation26_spill]]  ;;  %s291_s12 = sand.u32 1, %s1501_s9  }
  0xad   : > { %s292_s26 = scalar_lea.sflag [#allocation8], %s291_s12 }
  0xb2   : > { %s293_s21 = sand.u32 1, %s2006_s18  }
  0xb3   : > { %s832_s7 = sshll.u32 %s293_s21, 6 }
  0xb4   : > { %s1776_s29 = scalar_lea.vmem [#allocation7], %s832_s7 }
  0xb5   : > { %1332 = dma.done.wait (%p1524_p7), %s292_s26, 1024  }
  0xb6   : > { %1334 = vsyncadd (%p1524_p7), %s292_s26, 4294966272  ;;  %s303_s16 = sand.u32 1, %s1365_s25   ;;  %p2008_p12 = scmp.ne.s32.totalorder %s1988_s13, 0 }
  0xb7   : > { %s833_s22 = sshll.u32 %s303_s16, 2 }
  0xb8   : > { %s1783_s11 = scalar_lea.vmem [#allocation9], %s833_s22 }
  0xb9   : > { %1336 = dma.done.wait (%p2008_p12), %s292_s26, 64  }
  0xba   : > { %1338 = vsyncadd (%p2008_p12), %s292_s26, 4294967232  ;;  %s311_s0 = sand.u32 1, %s1353_s23  }
  0xbb   : > { %s834_s4 = sshll.u32 %s311_s0, 6  ;;  %s312_s2 = scalar_lea.sflag [#allocation11], %s311_s0 }
  0xbc   : > { %s1790_s20 = scalar_lea.vmem [#allocation10], %s834_s4 }
  0xbd   : > { %1340 = dma.done.wait (%p1699_p5), %s312_s2, 1024  }
  0xbe   : > { %1342 = vsyncadd (%p1699_p5), %s312_s2, 4294966272  ;;  %v925_v0 = vld [vmem:[%s1776_s29 + $0x38] sm:$0xff]  ;;  %v924_v1 = vld [vmem:[%s1776_s29 + $0x30] sm:$0xff]  ;;  %s835_s13 = sshll.u32 %s1764_s3, 5  ;;  %s934_s14 = sshll.u32 %s1501_s9, 5 }
  0xbf   : > { %446 = vmatpush.bf16.msra.mxu0 %v925_v0  ;;  %935 = vmatpush.bf16.msra.mxu2 %v925_v0  ;;  %v923_v2 = vld [vmem:[%s1776_s29 + $0x28] sm:$0xff]  ;;  %v922_v3 = vld [vmem:[%s1776_s29 + $0x20] sm:$0xff]  ;;  %v921_v4 = vld [vmem:[%s1776_s29 + $0x18] sm:$0xff]  ;;  %s355_s27 = scalar_lea.vmem [#allocation12], %s835_s13  ;;  %s2009_s10 = sld [smem:[#allocation40_spill]] }
  0xc0   : > { %v920_v5 = vld [vmem:[%s1776_s29 + $0x10] sm:$0xff]  ;;  %v919_v6 = vld [vmem:[%s1776_s29 + $0x8] sm:$0xff]  ;;  %v918_v7 = vld [vmem:[%s1776_s29] sm:$0xff]  ;;  %s674_s18 = sshll.u32 %s355_s27, 4  ;;  %s662_s9 = scalar_lea.sflag [#allocation6], %s1764_s3  ;;  %s675_s18 = int_to_ptr.vmem [resolvable:$true] %s674_s18 }
  0xc1   : > { %v916_v8 = vld [vmem:[%s1768_s5] sm:$0xff]  ;;  %v917_v9 = vld [vmem:[%s1768_s5 + $0x8] sm:$0xff]  ;;  %p2010_p8 = scmp.ne.s32.totalorder %s1977_s28, 0 }
  0xc2   : > { %v1101_v10 = vld [vmem:[%s1783_s11] ss:$0 sm:$0xff]  ;;  %v932_v28 = vld [vmem:[%s1790_s20 + $0x30] sm:$0xff]  ;;  %v931_v29 = vld [vmem:[%s1790_s20 + $0x28] sm:$0xff] }
  0xc3   : > { %447 = vmatpush.bf16.msra.mxu0 %v924_v1  ;;  %936 = vmatpush.bf16.msra.mxu2 %v924_v1  ;;  %v933_v27 = vld [vmem:[%s1790_s20 + $0x38] sm:$0xff]  ;;  %v930_v30 = vld [vmem:[%s1790_s20 + $0x20] sm:$0xff]  ;;  %v928_v34 = vld [vmem:[%s1790_s20 + $0x10] sm:$0xff] }
  0xc4   : > { %943 = vmatpush.bf16.msra.mxu3 %v933_v27  ;;  %638 = vmatpush.bf16.msra.mxu1 %v933_v27  ;;  %v929_v31 = vld [vmem:[%s1790_s20 + $0x18] sm:$0xff]  ;;  %v927_v40 = vld [vmem:[%s1790_s20 + $0x8] sm:$0xff]  ;;  %v926_v45 = vld [vmem:[%s1790_s20] sm:$0xff] }
  0xc5   : > { %s673_s5 = scalar_lea.hbm %s2009_s10, %s934_s14  ;;  %s1265_s29 = scalar_lea.hbm %s2009_s10, 64 }
  0xc6   : > { %s676_s19 = sshll.u32 %s673_s5, 4  ;;  %s677_s19 = int_to_ptr.hbm [resolvable:$true] %s676_s19 }
  0xc7   : > { %448 = vmatpush.bf16.msra.mxu0 %v923_v2  ;;  %937 = vmatpush.bf16.msra.mxu2 %v923_v2  ;;  %s1259_s12 = sshra.s32 %s677_s19, 4  ;;  %s1260_s12 = int_to_ptr.hbm [resolvable:$true] %s1259_s12 }
  0xc8   : > { %944 = vmatpush.bf16.msra.mxu3 %v932_v28  ;;  %639 = vmatpush.bf16.msra.mxu1 %v932_v28  ;;  %s1261_s21 = scalar_lea.hbm %s1260_s12, 32  ;;  %p1266_p11 = scmp.lt.s32.totalorder %s1260_s12, %s2009_s10 }
  0xc9   : > { %p1262_p7 = scmp.ne.s32.totalorder %s1260_s12, %s1261_s21  ;;  %p1267_p1 = scmp.lt.s32.totalorder %s1265_s29, %s1261_s21 }
  0xcb   : > { %449 = vmatpush.bf16.msra.mxu0 %v922_v3  ;;  %938 = vmatpush.bf16.msra.mxu2 %v922_v3  ;;  %p1263_p5 = pnand %p1262_p7, %p2010_p8  ;;  %p1268_p10 = por %p1267_p1, %p1266_p11 }
  0xcc   : > { %945 = vmatpush.bf16.msra.mxu3 %v931_v29  ;;  %640 = vmatpush.bf16.msra.mxu1 %v931_v29 }
  0xcd   : > { %p1264_p0 = pneg %p1263_p5 }
  0xcf   : > { %450 = vmatpush.bf16.msra.mxu0 %v921_v4  ;;  %939 = vmatpush.bf16.msra.mxu2 %v921_v4  ;;  %p1269_p4 = pnand %p1268_p10, %p1264_p0 }
  0xd0   : > { %946 = vmatpush.bf16.msra.mxu3 %v930_v30  ;;  %641 = vmatpush.bf16.msra.mxu1 %v930_v30 }
  0xd3   : > { %451 = vmatpush.bf16.msra.mxu0 %v920_v5  ;;  %940 = vmatpush.bf16.msra.mxu2 %v920_v5 }
  0xd4   : > { %947 = vmatpush.bf16.msra.mxu3 %v929_v31  ;;  %642 = vmatpush.bf16.msra.mxu1 %v929_v31 }
  0xd7   : > { %452 = vmatpush.bf16.msra.mxu0 %v919_v6  ;;  %941 = vmatpush.bf16.msra.mxu2 %v919_v6 }
  0xd8   : > { %948 = vmatpush.bf16.msra.mxu3 %v928_v34  ;;  %643 = vmatpush.bf16.msra.mxu1 %v928_v34 }
  0xdb   : > { %453 = vmatpush.bf16.msra.mxu0 %v918_v7  ;;  %942 = vmatpush.bf16.msra.mxu2 %v918_v7 }
  0xdc   : > { %949 = vmatpush.bf16.msra.mxu3 %v927_v40  ;;  %644 = vmatpush.bf16.msra.mxu1 %v927_v40 }
  0xde   : > { %454 = vmatmul.bf16.vlgmr.msra.gmra.mxu0 %v916_v8  ;;  %459 = vmatmul.bf16.vlgmr.msra.gmra.mxu2 %v917_v9 }
  0xe0   : > { %950 = vmatpush.bf16.msra.mxu3 %v926_v45  ;;  %645 = vmatpush.bf16.msra.mxu1 %v926_v45 }
 0x15b   : > { %v455_v11 = vpop.f32.mrf.mxu0 }
 0x15c   : > { %v456_v12 = vadd.f32 %v1101_v10, %v455_v11 }
 0x15e   : > { %v1807_v13 = vmax.f32 %v456_v12, 0.0 }
 0x160   : > { %469 = vadd.xlane.f32.xlu2 %v1807_v13  ;;  %v481_v25 = vmul.f32 %v1807_v13, %v1807_v13 }
 0x161   : > { %v460_v14 = vpop.f32.mrf.mxu2 }
 0x162   : > { %v461_v15 = vadd.f32 %v1101_v10, %v460_v14 }
 0x163   : > { %v457_v16 = vpop.f32.mrf.mxu0 }
 0x164   : > { %v1810_v17 = vmax.f32 %v461_v15, 0.0  ;;  %v458_v18 = vadd.f32 %v1101_v10, %v457_v16 }
 0x166   : > { %v1812_v19 = vmax.f32 %v458_v18, 0.0  ;;  %473 = vadd.xlane.f32.xlu0 %v1810_v17  ;;  %v483_v20 = vmul.f32 %v1810_v17, %v1810_v17 }
 0x168   : > { %489 = vadd.xlane.f32.xlu1 %v483_v20  ;;  %471 = vadd.xlane.f32.xlu2 %v1812_v19  ;;  %v482_v26 = vmul.f32 %v1812_v19, %v1812_v19 }
 0x169   : > { %v462_v21 = vpop.f32.mrf.mxu2 }
 0x16a   : > { %v463_v22 = vadd.f32 %v1101_v10, %v462_v21 }
 0x16c   : > { %v1818_v23 = vmax.f32 %v463_v22, 0.0 }
 0x16e   : > { %475 = vadd.xlane.f32.xlu0 %v1818_v23  ;;  %v484_v24 = vmul.f32 %v1818_v23, %v1818_v23 }
 0x170   : > { %491 = vadd.xlane.f32.xlu1 %v484_v24  ;;  %v1102_v24 = vld [vmem:[%s1783_s11 + $0x1] ss:$0 sm:$0xff] }
 0x176   : > { %485 = vadd.xlane.f32.xlu0 %v481_v25 }
 0x178   : > { %487 = vadd.xlane.f32.xlu1 %v482_v26 }
 0x1d3   : > { %v470_v38 = vpop.xlane.xlu2 %469 }
 0x1d4   : > { %v1843_v51 = vmul.f32 0.015625, %v470_v38 }
 0x1d6   : > { %v497_v55 = vmul.f32 %v1843_v51, %v1843_v51 }
 0x1d9   : > { %v474_v32 = vpop.xlane.xlu0 %473 }
 0x1da   : > { %v1832_v33 = vmul.f32 0.015625, %v474_v32 }
 0x1db   : > { %v490_v35 = vpop.xlane.xlu1 %489  ;;  %v472_v49 = vpop.xlane.xlu2 %471 }
 0x1dc   : > { %v499_v36 = vmul.f32 %v1832_v33, %v1832_v33  ;;  %v495_v37 = vmul.f32 0.015625, %v490_v35  ;;  %v1847_v56 = vmul.f32 0.015625, %v472_v49  ;;  %v511_v15 = vsub.f32 %v1810_v17, %v1832_v33  ;;  %v1103_v35 = vld [vmem:[%s1783_s11 + $0x2] ss:$0 sm:$0xff] }
 0x1de   : > { %v503_v39 = vsub.f32 %v495_v37, %v499_v36  ;;  %v498_v61 = vmul.f32 %v1847_v56, %v1847_v56 }
 0x1e0   : > { %v507_v41 = vmax.f32 %v503_v39, 0.0  ;;  %v509_v39 = vsub.f32 %v1807_v13, %v1843_v51 }
 0x1e1   : > { %v476_v42 = vpop.xlane.xlu0 %475 }
 0x1e2   : > { %v515_v43 = vadd.f32 1e-05, %v507_v41  ;;  %v1838_v44 = vmul.f32 0.015625, %v476_v42 }
 0x1e3   : > { %v492_v46 = vpop.xlane.xlu1 %491 }
 0x1e4   : > { %1105 = vrsqrt.f32 %v515_v43  ;;  %v500_v47 = vmul.f32 %v1838_v44, %v1838_v44  ;;  %v496_v48 = vmul.f32 0.015625, %v492_v46  ;;  %vm543_vm1 = vweird.f32 %v515_v43 }
 0x1e5   : > { %v512_v28 = vsub.f32 %v1818_v23, %v1838_v44 }
 0x1e6   : > { %v504_v50 = vsub.f32 %v496_v48, %v500_v47 }
 0x1e8   : > { %v508_v52 = vmax.f32 %v504_v50, 0.0 }
 0x1e9   : > { %v486_v53 = vpop.xlane.xlu0 %485 }
 0x1ea   : > { %v1106_v54 = vpop.eup %1105  ;;  %v493_v57 = vmul.f32 0.015625, %v486_v53  ;;  %v516_v59 = vadd.f32 1e-05, %v508_v52  ;;  %v1104_v52 = vld [vmem:[%s1783_s11 + $0x3] ss:$0 sm:$0xff] }
 0x1eb   : > { %v538_v58 = vmul.f32 %v1106_v54, %v515_v43  ;;  %v488_v60 = vpop.xlane.xlu1 %487  ;;  %vm544_vm0 = vweird.f32 %v1106_v54  ;;  %v510_v43 = vsub.f32 %v1812_v19, %v1847_v56 }
 0x1ec   : > { %v501_v62 = vsub.f32 %v493_v57, %v497_v55  ;;  %v494_v63 = vmul.f32 0.015625, %v488_v60  ;;  %1107 = vrsqrt.f32 %v516_v59  ;;  %vm545_vm2 = vmor %vm543_vm1, %vm544_vm0  ;;  %vm553_vm4 = vweird.f32 %v516_v59 }
 0x1ed   : > { %v539_v0 = vmul.f32 %v1106_v54, %v538_v58 }
 0x1ee   : > { %v505_v1 = vmax.f32 %v501_v62, 0.0  ;;  %v502_v2 = vsub.f32 %v494_v63, %v498_v61 }
 0x1ef   : > { %v540_v3 = vmul.f32 0.5, %v539_v0 }
 0x1f0   : > { %v513_v4 = vadd.f32 1e-05, %v505_v1  ;;  %v506_v5 = vmax.f32 %v502_v2, 0.0 }
 0x1f1   : > { %v541_v6 = vsub.f32 1.5, %v540_v3 }
 0x1f2   : > { %1109 = vrsqrt.f32 %v513_v4  ;;  %v514_v7 = vadd.f32 1e-05, %v506_v5  ;;  %v1108_v8 = vpop.eup %1107  ;;  %vm523_vm7 = vweird.f32 %v513_v4 }
 0x1f3   : > { %v542_v9 = vmul.f32 %v1106_v54, %v541_v6  ;;  %v548_v10 = vmul.f32 %v1108_v8, %v516_v59  ;;  %vm554_vm3 = vweird.f32 %v1108_v8 }
 0x1f4   : > { %1111 = vrsqrt.f32 %v514_v7  ;;  %vm555_vm5 = vmor %vm553_vm4, %vm554_vm3  ;;  %vm533_vm10 = vweird.f32 %v514_v7 }
 0x1f5   : > { %v549_v11 = vmul.f32 %v1108_v8, %v548_v10  ;;  %v546_v12 = vsel %vm545_vm2, %v1106_v54, %v542_v9 }
 0x1f6   : > { %v559_v22 = vmul.f32 %v546_v12, %v511_v15 }
 0x1f7   : > { %v550_v16 = vmul.f32 0.5, %v549_v11 }
 0x1f8   : > { %v1110_v14 = vpop.eup %1109  ;;  %v564_v17 = vmul.f32 %v1102_v24, %v559_v22 }
 0x1f9   : > { %v518_v18 = vmul.f32 %v1110_v14, %v513_v4  ;;  %v551_v21 = vsub.f32 1.5, %v550_v16  ;;  %vm524_vm6 = vweird.f32 %v1110_v14 }
 0x1fa   : > { %v1112_v20 = vpop.eup %1111  ;;  %vm525_vm9 = vmor %vm523_vm7, %vm524_vm6  ;;  %v569_v40 = vadd.f32 %v1103_v35, %v564_v17 }
 0x1fb   : > { %v519_v25 = vmul.f32 %v1110_v14, %v518_v18  ;;  %v528_v26 = vmul.f32 %v1112_v20, %v514_v7  ;;  %v552_v27 = vmul.f32 %v1108_v8, %v551_v21  ;;  %vm534_vm8 = vweird.f32 %v1112_v20 }
 0x1fc   : > { %vm535_vm11 = vmor %vm533_vm10, %vm534_vm8 }
 0x1fd   : > { %v520_v29 = vmul.f32 0.5, %v519_v25  ;;  %v529_v30 = vmul.f32 %v1112_v20, %v528_v26  ;;  %v556_v31 = vsel %vm555_vm5, %v1108_v8, %v552_v27 }
 0x1fe   : > { %v560_v34 = vmul.f32 %v556_v31, %v512_v28 }
 0x1ff   : > { %v521_v32 = vsub.f32 1.5, %v520_v29  ;;  %v530_v33 = vmul.f32 0.5, %v529_v30 }
 0x200   : > { %v565_v38 = vmul.f32 %v1102_v24, %v560_v34 }
 0x201   : > { %v522_v36 = vmul.f32 %v1110_v14, %v521_v32  ;;  %v531_v37 = vsub.f32 1.5, %v530_v33 }
 0x202   : > { %v570_v41 = vadd.f32 %v1103_v35, %v565_v38 }
 0x203   : > { %v532_v23 = vmul.f32 %v1112_v20, %v531_v37  ;;  %v526_v42 = vsel %vm525_vm9, %v1110_v14, %v522_v36 }
 0x204   : > { %v557_v44 = vmul.f32 %v526_v42, %v509_v39  ;;  %v572_v45 = vpack.c.bf16 %v570_v41, %v569_v40 }
 0x205   : > { %v536_v46 = vsel %vm535_vm11, %v1112_v20, %v532_v23 }
 0x206   : > { %v558_v47 = vmul.f32 %v536_v46, %v510_v43  ;;  %v562_v48 = vmul.f32 %v1102_v24, %v557_v44  ;;  %651 = vmatmul.bf16.vlgmr.msra.gmra.mxu3 %v572_v45 }
 0x208   : > { %v563_v13 = vmul.f32 %v1102_v24, %v558_v47  ;;  %v567_v49 = vadd.f32 %v1103_v35, %v562_v48 }
 0x20a   : > { %v568_v50 = vadd.f32 %v1103_v35, %v563_v13 }
 0x20c   : > { %v571_v51 = vpack.c.bf16 %v568_v50, %v567_v49 }
 0x20e   : > { %646 = vmatmul.bf16.vlgmr.msra.gmra.mxu1 %v571_v51 }
 0x289   : > { %v652_v53 = vpop.f32.mrf.mxu3 }
 0x28a   : > { %v653_v54 = vadd.f32 %v1104_v52, %v652_v53 }
 0x28b   : > { %v647_v55 = vpop.f32.mrf.mxu1 }
 0x28c   : > { %v648_v19 = vadd.f32 %v1104_v52, %v647_v55  ;;  %659 = vst [vmem:[%s355_s27 + $0x10] sm:$0xff] %v653_v54 }
 0x28e   : > { %657 = vst [vmem:[%s355_s27] sm:$0xff] %v648_v19 }
 0x291   : > { %v654_v56 = vpop.f32.mrf.mxu3 }
 0x292   : > { %v655_v57 = vadd.f32 %v1104_v52, %v654_v56 }
 0x293   : > { %v649_v58 = vpop.f32.mrf.mxu1 }
 0x294   : > { %v650_v59 = vadd.f32 %v1104_v52, %v649_v58  ;;  %660 = vst [vmem:[%s355_s27 + $0x18] sm:$0xff] %v655_v57 }
 0x296   : > { %658 = vst [vmem:[%s355_s27 + $0x8] sm:$0xff] %v650_v59 }
 0x297   : > { %1272 = shalt.err (!%p1269_p4)
}
 0x298   : > { %s1402_s3 = smov 128   ;;  %s1403_s11 = smov 8  }
 0x299   : > { %965 = dma.vmem_to_hbm [thread:$0]  (%p2010_p8), %s675_s18, 512, %s677_s19, %s662_s9, %s1402_s3, %s1402_s3, %s1403_s11  }
 0x29a PF: > { %s2011_s0 = sld [smem:[#allocation32_spill]]  ;;  %s691_s4 = sand.u32 1, %s1385_s30  }
 0x29b   : > { %p2013_p6 = scmp.ge.s32.totalorder %s1397_s8, 2  ;;  %s692_s2 = scalar_lea.sflag [#allocation6], %s691_s4 }
 0x2a0   : > { %p2012_p3 = scmp.ne.s32.totalorder %s2011_s0, 0 }
 0x2a2   : > { %p987_p9 = pnand %p2013_p6, %p2012_p3 }
 0x2a4   : > { %p988_p13 = pneg %p987_p9 }
 0x2a6   : > { %1344 = dma.done.wait (%p988_p13), %s692_s2, 512  }
 0x2a7   : > { %1346 = vsyncadd (%p988_p13), %s692_s2, 4294966784  ;;  %s2014_s8 = sld [smem:[#allocation29_spill]]  ;;  %s2024_s22 = smov %s1353_s23 }
 0x2a8   : > { %s2015_s20 = sld [smem:[#allocation35_spill]]  ;;  %s2025_s23 = smov %s1357_s24 }
 0x2a9   : > { %s2016_s13 = sld [smem:[#allocation25_spill]]  ;;  %s2027_s0 = smov %s1365_s25 }
 0x2aa   : > { %s2017_s26 = sld [smem:[#allocation34_spill]]  ;;  %s2029_s30 = smov %s1389_s6 }
 0x2ab   : > { %s2018_s27 = sld [smem:[#allocation26_spill]] }
 0x2ac   : > { %s2019_s28 = sld [smem:[#allocation27_spill]] }
 0x2ad   : > { %s2020_s29 = sld [smem:[#allocation31_spill]]  ;;  %p32_p2 = scmp.ge.s32.totalorder %s2014_s8, 4  }
 0x2ae   : > { %s2021_s14 = sld [smem:[#allocation28_spill]]  ;;  %s2026_s24 = smov %s2015_s20 }
 0x2af   : > { %s2022_s7 = sld [smem:[#allocation33_spill]]  ;;  %s2028_s25 = smov %s2016_s13 }
 0x2b0   :  { %34 = sbr.rel (!%p32_p2) target bundleno = 24 (0x18), region = 118 }
 0x2b4   : > { %s2030_s6 = smov %s2021_s14 }
 0x2b5   :  { %698 = vsyncpa [#allocation5], 1 }
 0x2b6   :  { %700 = vsyncpa [#allocation5 + $0x1], 1 }
 0x2b7   :  { %701 = vsyncpa [#allocation8], 1 }
 0x2b8   :  { %703 = vsyncpa [#allocation8 + $0x1], 1 }
 0x2b9   :  { %704 = vsyncpa [#allocation11], 1 }
 0x2ba   :  { %706 = vsyncpa [#allocation11 + $0x1], 1 }
 0x2bb   :  { %707 = vsyncpa [#allocation6], 1 }
 0x2bc   :  { %709 = vsyncpa [#allocation6 + $0x1], 1 }

</bundles_post_ra>
